<compile_context>
chip_gen: v7x
topology: tpu7x:2x2x1
jax: 0.10.0
libtpu: 0.0.40
codegen_flags: <defaults>
</compile_context>

<pallas_src>
import jax
import jax.numpy as jnp
from jax.experimental import pallas as pl
from jax.experimental.pallas import tpu as pltpu


def temporal_attention_kernel(x_ref, u1_ref, u2_ref, u3_ref, be_ref, ve_ref,
                              e_ref, p_scr):
    # x_ref block: (Bb, N, F, T) -- native layout, Bb batch elements per step.
    Bb, N, F, T = x_ref.shape

    x = x_ref[...].astype(jnp.float32)      # (Bb, N, F, T)
    u1 = u1_ref[...]                        # (N, T)  U1[n] replicated along lanes
    u2 = u2_ref[...]                        # (F, N)
    u3 = u3_ref[...]                        # (F, T)  U3[f] replicated along lanes
    be = be_ref[...]                        # (T, T)

    # Batched weighted reductions over the whole block (dominant VPU work;
    # broadcasts hoisted, each element of X is touched exactly twice):
    #   a[b, f, t] = sum_n U1[n] * X[b, n, f, t]
    #   r[b, n, t] = sum_f U3[f] * X[b, n, f, t]
    a = jnp.sum(x * u1[None, :, None, :], axis=1)    # (Bb, F, T)
    r = jnp.sum(x * u3[None, None, :, :], axis=2)    # (Bb, N, T)

    # Tiny per-batch MXU matmuls, written into a lane-dense (T, Bb*T) slab.
    for b in range(Bb):                               # Bb is small, static unroll
        # LHS[t, n] = sum_f a[b, f, t] * U2[f, n]
        lhs_b = jnp.dot(a[b].T, u2, preferred_element_type=jnp.float32)   # (T, N)
        # P[t, s] = sum_n LHS[t, n] * r[b, n, s]
        p_b = jnp.dot(lhs_b, r[b], preferred_element_type=jnp.float32)    # (T, T)
        p_scr[:, b * T:(b + 1) * T] = p_b + be

    # Lane-dense epilogue on the (T, Bb*T) slab: one sigmoid (EUP), one Ve
    # matmul (MXU), one column softmax (== PyTorch softmax(dim=1) per (b, s)).
    s_slab = jax.nn.sigmoid(p_scr[...])                                   # (T, Bb*T)
    e_slab = jnp.dot(ve_ref[...], s_slab, preferred_element_type=jnp.float32)
    e_max = jnp.max(e_slab, axis=0, keepdims=True)
    e_exp = jnp.exp(e_slab - e_max)
    e_sum = jnp.sum(e_exp, axis=0, keepdims=True)
    e_ref[0] = (e_exp / e_sum).astype(e_ref.dtype)


def temporal_attention(x, u1, u2, u3, be, ve, *, block_b=None):
    """x: (B, N, F, T).  Returns E: (B, T, T) float32 (softmax over dim=1)."""
    B, N, F, T = x.shape

    if block_b is None:
        # keep grid >= 2 when B >= 2 so both TensorCores (v7x) get work
        block_b = max(1, min(8, (B + 1) // 2))
    block_b = min(block_b, B)
    G = -(-B // block_b)                 # ceil(B / block_b)
    Bp = G * block_b
    if Bp != B:                          # pad batch to a multiple of block_b
        pad = jnp.zeros((Bp - B, N, F, T), x.dtype)
        x = jnp.concatenate([x, pad], axis=0)

    # Tiny parameter re-layouts (negligible bytes); X itself is NOT touched.
    u1_nt = jnp.broadcast_to(u1.astype(jnp.float32)[:, None], (N, T))    # (N, T)
    u2_2d = u2.astype(jnp.float32)                                       # (F, N)
    u3_ft = jnp.broadcast_to(u3.astype(jnp.float32)[:, None], (F, T))    # (F, T)
    be_2d = be.astype(jnp.float32).reshape(T, T)                         # (T, T)
    ve_2d = ve.astype(jnp.float32)                                       # (T, T)

    grid_spec = pltpu.PrefetchScalarGridSpec(
        num_scalar_prefetch=0,
        grid=(G,),
        in_specs=[
            pl.BlockSpec((block_b, N, F, T), lambda g: (g, 0, 0, 0)),
            pl.BlockSpec((N, T), lambda g: (0, 0)),
            pl.BlockSpec((F, N), lambda g: (0, 0)),
            pl.BlockSpec((F, T), lambda g: (0, 0)),
            pl.BlockSpec((T, T), lambda g: (0, 0)),
            pl.BlockSpec((T, T), lambda g: (0, 0)),
        ],
        out_specs=pl.BlockSpec((1, T, block_b * T), lambda g: (g, 0, 0)),
        scratch_shapes=[pltpu.VMEM((T, block_b * T), jnp.float32)],
    )

    e_slab = pl.pallas_call(
        temporal_attention_kernel,
        out_shape=jax.ShapeDtypeStruct((G, T, block_b * T), jnp.float32),
        grid_spec=grid_spec,
        compiler_params=pltpu.CompilerParams(
            dimension_semantics=("parallel",)),
    )(x, u1_nt, u2_2d, u3_ft, be_2d, ve_2d)

    # (G, T, Bb*T) -> (B, T, T): tiny output-side un-shuffle in plain JAX.
    e = e_slab.reshape(G, T, block_b, T).transpose(0, 2, 1, 3).reshape(Bp, T, T)
    return e[:B]


def reference(x, u1, u2, u3, be, ve):
    # Pure-JAX transcription of the PyTorch forward, for validation.
    lhs = jnp.matmul(jnp.matmul(jnp.transpose(x, (0, 3, 2, 1)), u1), u2)   # (B, T, N)
    rhs = jnp.einsum('f,bnft->bnt', u3, x)                                 # (B, N, T)
    e = jnp.matmul(ve, jax.nn.sigmoid(jnp.matmul(lhs, rhs) + be))          # (B, T, T)
    return jax.nn.softmax(e, axis=1)


def init_params(key, in_channels, num_vertices, num_timesteps):
    """Deterministic init mirroring the module: uniform_ for 1-D, xavier for >1-D."""
    k1, k2, k3, k4, k5 = jax.random.split(key, 5)

    def xavier(k, shape, fan_in, fan_out):
        bound = (6.0 / (fan_in + fan_out)) ** 0.5
        return jax.random.uniform(k, shape, jnp.float32, -bound, bound)

    u1 = jax.random.uniform(k1, (num_vertices,), jnp.float32)
    u2 = xavier(k2, (in_channels, num_vertices), in_channels, num_vertices)
    u3 = jax.random.uniform(k3, (in_channels,), jnp.float32)
    be = xavier(k4, (1, num_timesteps, num_timesteps),
                num_timesteps * num_timesteps, num_timesteps)
    ve = xavier(k5, (num_timesteps, num_timesteps), num_timesteps, num_timesteps)
    return u1, u2, u3, be, ve


if __name__ == "__main__":
    # batch, num_of_vertices, in_channels, num_of_timesteps
    B, N, F, T = 8, 16, 4, 8

    key = jax.random.PRNGKey(0)
    kx, kp = jax.random.split(key)
    x = jax.random.normal(kx, (B, N, F, T), jnp.float32)
    u1, u2, u3, be, ve = init_params(kp, F, N, T)

    e = temporal_attention(x, u1, u2, u3, be, ve)   # block_b=4 -> grid=(2,)
    e = jax.block_until_ready(e)

    e_ref = reference(x, u1, u2, u3, be, ve)
    assert e.shape == (B, T, T)
    assert jnp.allclose(e, e_ref, atol=2e-5, rtol=2e-5), "mismatch vs pure-JAX reference"

    print("KERNEL_OK")
</pallas_src>

<mosaic_0001>
module attributes {stable_mosaic.version = 11 : i64} {
  func.func @temporal_attention_kernel(%arg0: i32, %arg1: memref<4x16x4x8xf32, #tpu.memory_space<vmem>>, %arg2: memref<16x8xf32, #tpu.memory_space<vmem>>, %arg3: memref<4x16xf32, #tpu.memory_space<vmem>>, %arg4: memref<4x8xf32, #tpu.memory_space<vmem>>, %arg5: memref<8x8xf32, #tpu.memory_space<vmem>>, %arg6: memref<8x8xf32, #tpu.memory_space<vmem>>, %arg7: memref<1x8x32xf32, #tpu.memory_space<vmem>>, %arg8: memref<8x32xf32, #tpu.memory_space<vmem>>) attributes {dimension_semantics = [#tpu.dimension_semantics<parallel>], iteration_bounds = array<i64: 2>, scalar_prefetch = 0 : i64, scratch_operands = 1 : i64, tpu.core_type = #tpu.core_type<tc>, window_params = [{transform_indices = @transform_0, window_bounds = array<i64: 4, 16, 4, 8>}, {pipeline_mode = #tpu.pipeline_mode<synchronous>, transform_indices = @transform_1, window_bounds = array<i64: 16, 8>}, {pipeline_mode = #tpu.pipeline_mode<synchronous>, transform_indices = @transform_2, window_bounds = array<i64: 4, 16>}, {pipeline_mode = #tpu.pipeline_mode<synchronous>, transform_indices = @transform_3, window_bounds = array<i64: 4, 8>}, {pipeline_mode = #tpu.pipeline_mode<synchronous>, transform_indices = @transform_4, window_bounds = array<i64: 8, 8>}, {pipeline_mode = #tpu.pipeline_mode<synchronous>, transform_indices = @transform_5, window_bounds = array<i64: 8, 8>}, {transform_indices = @transform_6, window_bounds = array<i64: 1, 8, 32>}]} {
    %c0 = arith.constant 0 : index
    %c0_0 = arith.constant 0 : index
    %c0_1 = arith.constant 0 : index
    %c0_2 = arith.constant 0 : index
    %0 = vector.load %arg1[%c0, %c0_0, %c0_1, %c0_2] : memref<4x16x4x8xf32, #tpu.memory_space<vmem>>, vector<4x16x4x8xf32>
    %c0_3 = arith.constant 0 : index
    %c0_4 = arith.constant 0 : index
    %1 = vector.load %arg2[%c0_3, %c0_4] : memref<16x8xf32, #tpu.memory_space<vmem>>, vector<16x8xf32>
    %c0_5 = arith.constant 0 : index
    %c0_6 = arith.constant 0 : index
    %2 = vector.load %arg3[%c0_5, %c0_6] : memref<4x16xf32, #tpu.memory_space<vmem>>, vector<4x16xf32>
    %c0_7 = arith.constant 0 : index
    %c0_8 = arith.constant 0 : index
    %3 = vector.load %arg4[%c0_7, %c0_8] : memref<4x8xf32, #tpu.memory_space<vmem>>, vector<4x8xf32>
    %c0_9 = arith.constant 0 : index
    %c0_10 = arith.constant 0 : index
    %4 = vector.load %arg5[%c0_9, %c0_10] : memref<8x8xf32, #tpu.memory_space<vmem>>, vector<8x8xf32>
    %5 = vector.shape_cast %1 : vector<16x8xf32> to vector<1x16x1x8xf32>
    %6 = vector.broadcast %5 : vector<1x16x1x8xf32> to vector<4x16x4x8xf32>
    %7 = arith.mulf %0, %6 : vector<4x16x4x8xf32>
    %cst = arith.constant dense<0.000000e+00> : vector<4x4x8xf32>
    %8 = vector.multi_reduction <add>, %7, %cst [1] : vector<4x16x4x8xf32> to vector<4x4x8xf32>
    %9 = vector.shape_cast %3 : vector<4x8xf32> to vector<1x1x4x8xf32>
    %10 = vector.broadcast %9 : vector<1x1x4x8xf32> to vector<4x16x4x8xf32>
    %11 = arith.mulf %0, %10 : vector<4x16x4x8xf32>
    %cst_11 = arith.constant dense<0.000000e+00> : vector<4x16x8xf32>
    %12 = vector.multi_reduction <add>, %11, %cst_11 [2] : vector<4x16x4x8xf32> to vector<4x16x8xf32>
    %13 = vector.extract_strided_slice %8 {offsets = [0, 0, 0], sizes = [1, 4, 8], strides = [1, 1, 1]} : vector<4x4x8xf32> to vector<1x4x8xf32>
    %14 = vector.shape_cast %13 : vector<1x4x8xf32> to vector<4x8xf32>
    %15 = tpu.transpose %14, [1, 0] : vector<4x8xf32> -> vector<8x4xf32>
    %cst_12 = arith.constant dense<0.000000e+00> : vector<8x16xf32>
    %16 = tpu.matmul %15, %2, %cst_12 {dimension_numbers = #tpu.dot_dimension_numbers<[1], [0], [0], [1], [0, 0, 1, 1], [], []>} : vector<8x4xf32>, vector<4x16xf32>, vector<8x16xf32> -> vector<8x16xf32>
    %17 = vector.extract_strided_slice %12 {offsets = [0, 0, 0], sizes = [1, 16, 8], strides = [1, 1, 1]} : vector<4x16x8xf32> to vector<1x16x8xf32>
    %18 = vector.shape_cast %17 : vector<1x16x8xf32> to vector<16x8xf32>
    %cst_13 = arith.constant dense<0.000000e+00> : vector<8x8xf32>
    %19 = tpu.matmul %16, %18, %cst_13 {dimension_numbers = #tpu.dot_dimension_numbers<[1], [0], [0], [1], [0, 0, 1, 1], [], []>} : vector<8x16xf32>, vector<16x8xf32>, vector<8x8xf32> -> vector<8x8xf32>
    %20 = arith.addf %19, %4 : vector<8x8xf32>
    %c0_14 = arith.constant 0 : index
    %c0_15 = arith.constant 0 : index
    %21 = vector.load %arg8[%c0_14, %c0_15] : memref<8x32xf32, #tpu.memory_space<vmem>>, vector<8x8xf32>
    tpu.vector_store %arg8[%c0_14, %c0_15], %20 {strides = array<i32>} : memref<8x32xf32, #tpu.memory_space<vmem>>, vector<8x8xf32>,
    %22 = vector.extract_strided_slice %8 {offsets = [1, 0, 0], sizes = [1, 4, 8], strides = [1, 1, 1]} : vector<4x4x8xf32> to vector<1x4x8xf32>
    %23 = vector.shape_cast %22 : vector<1x4x8xf32> to vector<4x8xf32>
    %24 = tpu.transpose %23, [1, 0] : vector<4x8xf32> -> vector<8x4xf32>
    %cst_16 = arith.constant dense<0.000000e+00> : vector<8x16xf32>
    %25 = tpu.matmul %24, %2, %cst_16 {dimension_numbers = #tpu.dot_dimension_numbers<[1], [0], [0], [1], [0, 0, 1, 1], [], []>} : vector<8x4xf32>, vector<4x16xf32>, vector<8x16xf32> -> vector<8x16xf32>
    %26 = vector.extract_strided_slice %12 {offsets = [1, 0, 0], sizes = [1, 16, 8], strides = [1, 1, 1]} : vector<4x16x8xf32> to vector<1x16x8xf32>
    %27 = vector.shape_cast %26 : vector<1x16x8xf32> to vector<16x8xf32>
    %cst_17 = arith.constant dense<0.000000e+00> : vector<8x8xf32>
    %28 = tpu.matmul %25, %27, %cst_17 {dimension_numbers = #tpu.dot_dimension_numbers<[1], [0], [0], [1], [0, 0, 1, 1], [], []>} : vector<8x16xf32>, vector<16x8xf32>, vector<8x8xf32> -> vector<8x8xf32>
    %29 = arith.addf %28, %4 : vector<8x8xf32>
    %c0_18 = arith.constant 0 : index
    %c8 = arith.constant 8 : index
    %30 = vector.load %arg8[%c0_18, %c8] : memref<8x32xf32, #tpu.memory_space<vmem>>, vector<8x8xf32>
    tpu.vector_store %arg8[%c0_18, %c8], %29 {strides = array<i32>} : memref<8x32xf32, #tpu.memory_space<vmem>>, vector<8x8xf32>,
    %31 = vector.extract_strided_slice %8 {offsets = [2, 0, 0], sizes = [1, 4, 8], strides = [1, 1, 1]} : vector<4x4x8xf32> to vector<1x4x8xf32>
    %32 = vector.shape_cast %31 : vector<1x4x8xf32> to vector<4x8xf32>
    %33 = tpu.transpose %32, [1, 0] : vector<4x8xf32> -> vector<8x4xf32>
    %cst_19 = arith.constant dense<0.000000e+00> : vector<8x16xf32>
    %34 = tpu.matmul %33, %2, %cst_19 {dimension_numbers = #tpu.dot_dimension_numbers<[1], [0], [0], [1], [0, 0, 1, 1], [], []>} : vector<8x4xf32>, vector<4x16xf32>, vector<8x16xf32> -> vector<8x16xf32>
    %35 = vector.extract_strided_slice %12 {offsets = [2, 0, 0], sizes = [1, 16, 8], strides = [1, 1, 1]} : vector<4x16x8xf32> to vector<1x16x8xf32>
    %36 = vector.shape_cast %35 : vector<1x16x8xf32> to vector<16x8xf32>
    %cst_20 = arith.constant dense<0.000000e+00> : vector<8x8xf32>
    %37 = tpu.matmul %34, %36, %cst_20 {dimension_numbers = #tpu.dot_dimension_numbers<[1], [0], [0], [1], [0, 0, 1, 1], [], []>} : vector<8x16xf32>, vector<16x8xf32>, vector<8x8xf32> -> vector<8x8xf32>
    %38 = arith.addf %37, %4 : vector<8x8xf32>
    %c0_21 = arith.constant 0 : index
    %c16 = arith.constant 16 : index
    %39 = vector.load %arg8[%c0_21, %c16] : memref<8x32xf32, #tpu.memory_space<vmem>>, vector<8x8xf32>
    tpu.vector_store %arg8[%c0_21, %c16], %38 {strides = array<i32>} : memref<8x32xf32, #tpu.memory_space<vmem>>, vector<8x8xf32>,
    %40 = vector.extract_strided_slice %8 {offsets = [3, 0, 0], sizes = [1, 4, 8], strides = [1, 1, 1]} : vector<4x4x8xf32> to vector<1x4x8xf32>
    %41 = vector.shape_cast %40 : vector<1x4x8xf32> to vector<4x8xf32>
    %42 = tpu.transpose %41, [1, 0] : vector<4x8xf32> -> vector<8x4xf32>
    %cst_22 = arith.constant dense<0.000000e+00> : vector<8x16xf32>
    %43 = tpu.matmul %42, %2, %cst_22 {dimension_numbers = #tpu.dot_dimension_numbers<[1], [0], [0], [1], [0, 0, 1, 1], [], []>} : vector<8x4xf32>, vector<4x16xf32>, vector<8x16xf32> -> vector<8x16xf32>
    %44 = vector.extract_strided_slice %12 {offsets = [3, 0, 0], sizes = [1, 16, 8], strides = [1, 1, 1]} : vector<4x16x8xf32> to vector<1x16x8xf32>
    %45 = vector.shape_cast %44 : vector<1x16x8xf32> to vector<16x8xf32>
    %cst_23 = arith.constant dense<0.000000e+00> : vector<8x8xf32>
    %46 = tpu.matmul %43, %45, %cst_23 {dimension_numbers = #tpu.dot_dimension_numbers<[1], [0], [0], [1], [0, 0, 1, 1], [], []>} : vector<8x16xf32>, vector<16x8xf32>, vector<8x8xf32> -> vector<8x8xf32>
    %47 = arith.addf %46, %4 : vector<8x8xf32>
    %c0_24 = arith.constant 0 : index
    %c24 = arith.constant 24 : index
    %48 = vector.load %arg8[%c0_24, %c24] : memref<8x32xf32, #tpu.memory_space<vmem>>, vector<8x8xf32>
    tpu.vector_store %arg8[%c0_24, %c24], %47 {strides = array<i32>} : memref<8x32xf32, #tpu.memory_space<vmem>>, vector<8x8xf32>,
    %c0_25 = arith.constant 0 : index
    %c0_26 = arith.constant 0 : index
    %49 = vector.load %arg8[%c0_25, %c0_26] : memref<8x32xf32, #tpu.memory_space<vmem>>, vector<8x32xf32>
    %50 = arith.negf %49 : vector<8x32xf32>
    %51 = math.exp %50 : vector<8x32xf32>
    %cst_27 = arith.constant 1.000000e+00 : f32
    %52 = vector.broadcast %cst_27 : f32 to vector<8x32xf32>
    %53 = arith.addf %52, %51 : vector<8x32xf32>
    %54 = arith.divf %52, %53 : vector<8x32xf32>
    %c0_28 = arith.constant 0 : index
    %c0_29 = arith.constant 0 : index
    %55 = vector.load %arg6[%c0_28, %c0_29] : memref<8x8xf32, #tpu.memory_space<vmem>>, vector<8x8xf32>
    %cst_30 = arith.constant dense<0.000000e+00> : vector<8x32xf32>
    %56 = tpu.matmul %55, %54, %cst_30 {dimension_numbers = #tpu.dot_dimension_numbers<[1], [0], [0], [1], [0, 0, 1, 1], [], []>} : vector<8x8xf32>, vector<8x32xf32>, vector<8x32xf32> -> vector<8x32xf32>
    %cst_31 = arith.constant dense<0xFF800000> : vector<32xf32>
    %57 = vector.multi_reduction <maximumf>, %56, %cst_31 [0] : vector<8x32xf32> to vector<32xf32>
    %58 = vector.shape_cast %57 : vector<32xf32> to vector<1x32xf32>
    %59 = vector.broadcast %58 : vector<1x32xf32> to vector<8x32xf32>
    %60 = arith.subf %56, %59 : vector<8x32xf32>
    %61 = math.exp %60 : vector<8x32xf32>
    %cst_32 = arith.constant dense<0.000000e+00> : vector<32xf32>
    %62 = vector.multi_reduction <add>, %61, %cst_32 [0] : vector<8x32xf32> to vector<32xf32>
    %63 = vector.shape_cast %62 : vector<32xf32> to vector<1x32xf32>
    %64 = vector.broadcast %63 : vector<1x32xf32> to vector<8x32xf32>
    %65 = arith.divf %61, %64 : vector<8x32xf32>
    %c0_33 = arith.constant 0 : index
    %c0_34 = arith.constant 0 : index
    %c0_35 = arith.constant 0 : index
    %66 = vector.load %arg7[%c0_33, %c0_34, %c0_35] : memref<1x8x32xf32, #tpu.memory_space<vmem>>, vector<1x8x32xf32>
    %67 = vector.shape_cast %66 : vector<1x8x32xf32> to vector<8x32xf32>
    %68 = vector.shape_cast %65 : vector<8x32xf32> to vector<1x8x32xf32>
    tpu.vector_store %arg7[%c0_33, %c0_34, %c0_35], %68 {strides = array<i32>} : memref<1x8x32xf32, #tpu.memory_space<vmem>>, vector<1x8x32xf32>,
    return
  }
  func.func @transform_0(%arg0: i32) -> (i32, i32, i32, i32) {
    %c0_i32 = arith.constant 0 : i32
    %c0_i32_0 = arith.constant 0 : i32
    %c0_i32_1 = arith.constant 0 : i32
    %c0_i32_2 = arith.constant 0 : i32
    return %arg0, %c0_i32, %c0_i32_0, %c0_i32_1 : i32, i32, i32, i32
  }
  func.func @transform_1(%arg0: i32) -> (i32, i32) {
    %c0_i32 = arith.constant 0 : i32
    %c0_i32_0 = arith.constant 0 : i32
    %c0_i32_1 = arith.constant 0 : i32
    return %c0_i32, %c0_i32_0 : i32, i32
  }
  func.func @transform_2(%arg0: i32) -> (i32, i32) {
    %c0_i32 = arith.constant 0 : i32
    %c0_i32_0 = arith.constant 0 : i32
    %c0_i32_1 = arith.constant 0 : i32
    return %c0_i32, %c0_i32_0 : i32, i32
  }
  func.func @transform_3(%arg0: i32) -> (i32, i32) {
    %c0_i32 = arith.constant 0 : i32
    %c0_i32_0 = arith.constant 0 : i32
    %c0_i32_1 = arith.constant 0 : i32
    return %c0_i32, %c0_i32_0 : i32, i32
  }
  func.func @transform_4(%arg0: i32) -> (i32, i32) {
    %c0_i32 = arith.constant 0 : i32
    %c0_i32_0 = arith.constant 0 : i32
    %c0_i32_1 = arith.constant 0 : i32
    return %c0_i32, %c0_i32_0 : i32, i32
  }
  func.func @transform_5(%arg0: i32) -> (i32, i32) {
    %c0_i32 = arith.constant 0 : i32
    %c0_i32_0 = arith.constant 0 : i32
    %c0_i32_1 = arith.constant 0 : i32
    return %c0_i32, %c0_i32_0 : i32, i32
  }
  func.func @transform_6(%arg0: i32) -> (i32, i32, i32) {
    %c0_i32 = arith.constant 0 : i32
    %c0_i32_0 = arith.constant 0 : i32
    %c0_i32_1 = arith.constant 0 : i32
    return %arg0, %c0_i32, %c0_i32_0 : i32, i32, i32
  }
}

</mosaic_0001>

<bundles_post_ra>
// kernel: tpu_custom_call.1
= control target key start
LH: loop header
LB: loop body
LE: loop exit
PB: predicated region body
PF: predicated region fallthrough
CT: control target
= control target key end

     0   :  { %11 = vsyncpa [#allocation4], 0  ;;  %s3479_s0 = inlined_call_operand.vmem [shape: f32[8,16,4,8], index: 0, kind: input, shape index: {}]   ;;  %s3480_s1 = inlined_call_operand.vmem [shape: f32[16,8], index: 1, kind: input, shape index: {}]   ;;  %s3481_s2 = inlined_call_operand.vmem [shape: f32[4,16], index: 2, kind: input, shape index: {}]   ;;  %s3482_s3 = inlined_call_operand.vmem [shape: f32[4,8], index: 3, kind: input, shape index: {}]   ;;  %s3483_s4 = inlined_call_operand.vmem [shape: f32[8,8], index: 4, kind: input, shape index: {}]   ;;  %s3484_s5 = inlined_call_operand.vmem [shape: f32[8,8], index: 5, kind: input, shape index: {}]   ;;  %s3485_s6 = inlined_call_operand.hbm [shape: f32[2,8,32], index: 6, kind: output, shape index: {}]  }
   0x1   :  { %13 = vsyncpa [#allocation4 + $0x1], 0  ;;  %s2547_s21 = smov 0   ;;  %s2549_s22 = smov 0  }
   0x2   :  { %s2551_s23 = smov 0   ;;  %s2553_s24 = smov 0  }
   0x3 LB: > { %s2568_s25 = sadd.s32 4294967295, %s2502_s24   ;;  %s2253_s26 = sadd.s32 4294967294, %s2502_s24   ;;  %s2502_s24 = sphi %s2553_s24, %s3540_s24   ;;  %s2498_s23 = sphi %s2551_s23, %s3539_s23   ;;  %s2494_s22 = sphi %s2549_s22, %s3538_s22   ;;  %s2490_s21 = sphi %s2547_s21, %s3537_s21  }
   0x4   : > { %s2572_s27 = sadd.s32 1, %s2502_s24   ;;  %s157_s28 = sadd.s32 1, %s2498_s23 }
   0x5   : > { %s154_s29 = ssub.s32 %s2502_s24, %s2572_s27  ;;  %p167_p0 = scmp.ne.s32.totalorder %s2498_s23, %s2494_s22 }
   0x6   : > { %p155_p1 = scmp.eq.s32.totalorder %s154_s29, 0  ;;  %p168_p2 = scmp.eq.s32.totalorder %s2568_s25, 1 }
   0x7   : > { %p173_p3 = scmp.ne.s32.totalorder %s2494_s22, %s2490_s21  ;;  %p174_p4 = scmp.eq.s32.totalorder %s2253_s26, 1 }
   0x8   : > { %s2583_s30 = scalar_select %p155_p1, %s2498_s23, %s157_s28  }
   0x9   : > { %p2585_p5 = por %p168_p2, %p167_p0  ;;  %p2589_p6 = por %p174_p4, %p173_p3 }
   0xa   : > { %p2256_p7 = scmp.ge.s32.totalorder %s2502_s24, 1  ;;  %p217_p8 = scmp.lt.s32.totalorder %s2502_s24, 3 }
   0xc   : > { %p218_p9 = pnand %p2256_p7, %p217_p8 }
   0xe   : > { %221 = sbr.rel (%p218_p9) target bundleno = 1115 (0x45b), region = 44 }
  0x15   : > { %s2258_s9 = sshll.u32 %s2568_s25, 2  ;;  %v330_v0 = vlaneseq  ;;  %v2504_v1 = vmov 1966171168   ;;  %v2603_v4 = vld [vmem:[%s3481_s2] sm:$0xf]  ;;  %vm1241_vm0 = vcmask 1043456  }
  0x16   : > { %p2596_p10 = scmp.lt.s32.totalorder %s2258_s9, 7  ;;  %v328_v2 = vunpack.c.l.s4 %v2504_v1  ;;  %v319_v5 = vld [vmem:[%s3480_s1] sm:$0xff]  ;;  %v3486_v7 = vmov 0.0   ;;  %vm2506_vm1 = vmmov 0   ;;  %v320_v18 = vld [vmem:[%s3480_s1 + $0x8] sm:$0xff]  ;;  %vm568_vm2 = vcmask 60416  }
  0x17   : > { %v331_v3 = vshrl.u32 %v330_v0, 7  ;;  %2302 = vmatprep.subr.mxu0 %v3486_v7  ;;  %2304 = vmatprep.mubr.msk.f32.mxu0 %vm2506_vm1, %v3486_v7  ;;  %v326_v8 = vcombine.high %v319_v5, %v319_v5  ;;  %v375_v37 = vcombine.high %v320_v18, %v320_v18  ;;  %vm1331_vm3 = vcmask 1041409   ;;  %s2508_s12 = smov 8   ;;  %s2509_s13 = smov 16  }
  0x18   : > { %v329_v6 = vunpack.c.0.s8 %v328_v2  ;;  %2303 = vmatpush3.msk.msra.mxu0 %vm1241_vm0, %v2603_v4  ;;  %2311 = vmatprep.mubr.msk.f32.mxu1 %vm2506_vm1, %v3486_v7  ;;  %s3542_s9 = smov (!%p2596_p10, %s2258_s9), 7  ;;  %vm1333_vm4 = vcmask 1042434   ;;  %vm1335_vm5 = vcmask 1043459   ;;  %vm1337_vm6 = vcmask 1044484   ;;  %s2510_s14 = smov 24  }
  0x19   : > { %2314 = vmatprep.subr.mxu0 %v3486_v7  ;;  %s2279_s15 = sshll.u32 %s3542_s9, 6  ;;  %v2623_v14 = vsub.s32 0, %v331_v3  ;;  %vm1339_vm7 = vcmask 1045509   ;;  %vm1341_vm8 = vcmask 1046534   ;;  %vm1343_vm9 = vcmask 1047559   ;;  %s245_s17 = sand.u32 1, %s2494_s22  }
  0x1a   : > { %v2617_v9 = vsub.s32 %v329_v6, %v331_v3  ;;  %s2629_s18 = scalar_lea.vmem %s3479_s0, %s2279_s15  ;;  %vm1237_vm10 = vcmask 31744   ;;  %vm1354_vm11 = vcmask 130048   ;;  %vm1428_vm12 = vcmask 64512   ;;  %s2276_s19 = sshll.u32 %s2568_s25, 7 }
  0x1b   : > { %v2645_v24 = vld [vmem:[%s2629_s18] sm:$0xf]  ;;  %v2648_v25 = vld [vmem:[%s2629_s18 + $0x4] sm:$0xf]  ;;  %v2651_v26 = vld [vmem:[%s2629_s18 + $0x8] sm:$0xf]  ;;  %s3436_s9 = scalar_lea.hbm %s3485_s6, %s2276_s19 }
  0x1c   : > { %v333_v10 = vrot.slane %v319_v5, %v2617_v9  ;;  %v340_v11 = vrot.slane %v326_v8, %v2617_v9  ;;  %v382_v28 = vrot.slane %v320_v18, %v2617_v9  ;;  %v2659_v30 = vld [vmem:[%s2629_s18 + $0xc] sm:$0xf]  ;;  %v2671_v36 = vld [vmem:[%s2629_s18 + $0x10] sm:$0xf]  ;;  %v2679_v42 = vld [vmem:[%s2629_s18 + $0x14] sm:$0xf]  ;;  %v389_v50 = vrot.slane %v375_v37, %v2617_v9 }
  0x1d   : > { %v2691_v49 = vld [vmem:[%s2629_s18 + $0x18] sm:$0xf]  ;;  %v2702_v56 = vld [vmem:[%s2629_s18 + $0x1c] sm:$0xf]  ;;  %v2711_v62 = vld [vmem:[%s2629_s18 + $0x20] sm:$0xf] }
  0x1e   : > { %v341_v12 = vcombine.high %v333_v10, %v333_v10  ;;  %v349_v13 = vrot.slane %v333_v10, %v2617_v9  ;;  %v342_v17 = vcombine.high %v340_v11, %v340_v11  ;;  %v356_v20 = vrot.slane %v340_v11, %v2617_v9  ;;  %v2720_v6 = vld [vmem:[%s2629_s18 + $0x24] sm:$0xf]  ;;  %s2181_s10 = scalar_lea.sflag [#allocation4], %s245_s17  ;;  %s2511_s25 = smov [#allocation3]  }
  0x1f   : > { %v390_v39 = vcombine.high %v382_v28, %v382_v28  ;;  %v398_v43 = vrot.slane %v382_v28, %v2617_v9  ;;  %v391_v63 = vcombine.high %v389_v50, %v389_v50  ;;  %v405_v10 = vrot.slane %v389_v50, %v2617_v9 }
  0x20   : > { %v363_v15 = vrot.slane %v341_v12, %v2617_v9  ;;  %v371_v16 = vcombine.high %v349_v13, %v349_v13  ;;  %v2636_v21 = vrot.slane %v349_v13, %v2623_v14  ;;  %v370_v27 = vrot.slane %v342_v17, %v2617_v9 }
  0x21   : > { %v372_v31 = vcombine.high %v356_v20, %v356_v20  ;;  %v2662_v32 = vrot.slane %v356_v20, %v2623_v14  ;;  %v412_v52 = vrot.slane %v390_v39, %v2617_v9  ;;  %v420_v58 = vcombine.high %v398_v43, %v398_v43 }
  0x22   : > { %v373_v19 = vcombine.high %v363_v15, %v363_v15  ;;  %v2639_v22 = vrot.slane %v363_v15, %v2623_v14  ;;  %v2642_v23 = vrot.slane %v371_v16, %v2623_v14  ;;  %v504_v33 = vmul.f32 %v2636_v21, %v2645_v24  ;;  %v2730_v15 = vld [vmem:[%s2629_s18 + $0x28] sm:$0xf] }
  0x23   : > { %v374_v38 = vcombine.high %v370_v27, %v370_v27  ;;  %v2674_v40 = vrot.slane %v370_v27, %v2623_v14  ;;  %v2683_v44 = vrot.slane %v372_v31, %v2623_v14  ;;  %v508_v45 = vmul.f32 %v2662_v32, %v2671_v36  ;;  %v2740_v27 = vld [vmem:[%s2629_s18 + $0x2c] sm:$0xf] }
  0x24   : > { %v2656_v29 = vrot.slane %v373_v19, %v2623_v14  ;;  %v505_v34 = vmul.f32 %v2639_v22, %v2648_v25  ;;  %v506_v35 = vmul.f32 %v2642_v23, %v2651_v26  ;;  %v569_v46 = vsel %vm568_vm2, %v504_v33, 0.0 }
  0x25   : > { %v2696_v53 = vrot.slane %v374_v38, %v2623_v14  ;;  %v509_v54 = vmul.f32 %v2674_v40, %v2679_v42  ;;  %v2705_v59 = vrot.slane %v398_v43, %v2623_v14  ;;  %v510_v60 = vmul.f32 %v2683_v44, %v2691_v49  ;;  %v271_v38 = vld [vmem:[%s2629_s18 + $0x40] sm:$0xf] }
  0x26   : > { %v507_v41 = vmul.f32 %v2656_v29, %v2659_v30  ;;  %v570_v47 = vsel %vm568_vm2, %v505_v34, 0.0  ;;  %v572_v48 = vsel %vm568_vm2, %v506_v35, 0.0  ;;  %v576_v61 = vsel %vm568_vm2, %v508_v45, 0.0  ;;  %v2749_v35 = vld [vmem:[%s2629_s18 + $0x30] sm:$0xf] }
  0x27   : > { %v571_v51 = vadd.f32 %v570_v47, %v569_v46  ;;  %v422_v1 = vcombine.high %v412_v52, %v412_v52  ;;  %v2714_v2 = vrot.slane %v412_v52, %v2623_v14  ;;  %v511_v3 = vmul.f32 %v2696_v53, %v2702_v56  ;;  %v272_v46 = vld [vmem:[%s2629_s18 + $0x44] sm:$0xf]  ;;  %v273_v47 = vld [vmem:[%s2629_s18 + $0x48] sm:$0xf] }
  0x28   : > { %v574_v55 = vsel %vm568_vm2, %v507_v41, 0.0  ;;  %v578_v5 = vsel %vm568_vm2, %v509_v54, 0.0  ;;  %v2724_v11 = vrot.slane %v420_v58, %v2623_v14  ;;  %v512_v12 = vmul.f32 %v2705_v59, %v2711_v62 }
  0x29   : > { %v573_v57 = vadd.f32 %v572_v48, %v571_v51  ;;  %v580_v13 = vsel %vm568_vm2, %v510_v60, 0.0  ;;  %v419_v17 = vrot.slane %v391_v63, %v2617_v9  ;;  %v2734_v18 = vrot.slane %v422_v1, %v2623_v14  ;;  %v2761_v48 = vld [vmem:[%s2629_s18 + $0x34] sm:$0xf]  ;;  %v275_v60 = vld [vmem:[%s2629_s18 + $0x50] sm:$0xf] }
  0x2a   : > { %v513_v19 = vmul.f32 %v2714_v2, %v2720_v6  ;;  %v582_v20 = vsel %vm568_vm2, %v511_v3, 0.0  ;;  %v421_v31 = vcombine.high %v405_v10, %v405_v10  ;;  %v2743_v33 = vrot.slane %v405_v10, %v2623_v14 }
  0x2b   : > { %v575_v0 = vadd.f32 %v574_v55, %v573_v57  ;;  %v514_v9 = vmul.f32 %v2724_v11, %v2730_v15  ;;  %v584_v34 = vsel %vm568_vm2, %v512_v12, 0.0  ;;  %v423_v39 = vcombine.high %v419_v17, %v419_v17  ;;  %v274_v55 = vld [vmem:[%s2629_s18 + $0x4c] sm:$0xf]  ;;  %v2771_v57 = vld [vmem:[%s2629_s18 + $0x38] sm:$0xf] }
  0x2c   : > { %v2753_v41 = vrot.slane %v419_v17, %v2623_v14  ;;  %v515_v43 = vmul.f32 %v2734_v18, %v2740_v27  ;;  %v586_v45 = vsel %vm568_vm2, %v513_v19, 0.0  ;;  %v2764_v51 = vrot.slane %v421_v31, %v2623_v14  ;;  %v276_v17 = vld [vmem:[%s2629_s18 + $0x54] sm:$0xf] }
  0x2d   : > { %v577_v8 = vadd.f32 %v576_v61, %v575_v0  ;;  %v516_v52 = vmul.f32 %v2743_v33, %v2749_v35  ;;  %v588_v54 = vsel %vm568_vm2, %v514_v9, 0.0  ;;  %v520_v61 = vmul.f32 %v2636_v21, %v271_v38 }
  0x2e   : > { %v521_v63 = vmul.f32 %v2639_v22, %v272_v46  ;;  %v522_v0 = vmul.f32 %v2642_v23, %v273_v47  ;;  %v2778_v1 = vrot.slane %v423_v39, %v2623_v14  ;;  %v517_v3 = vmul.f32 %v2753_v41, %v2761_v48  ;;  %v278_v47 = vld [vmem:[%s2629_s18 + $0x5c] sm:$0xf] }
  0x2f   : > { %v579_v16 = vadd.f32 %v578_v5, %v577_v8  ;;  %v590_v5 = vsel %vm568_vm2, %v515_v43, 0.0  ;;  %v2784_v8 = vld [vmem:[%s2629_s18 + $0x3c] sm:$0xf]  ;;  %v523_v12 = vmul.f32 %v2656_v29, %v274_v55  ;;  %v524_v14 = vmul.f32 %v2662_v32, %v275_v60  ;;  %v2807_v60 = vld [vmem:[%s2629_s18 + $0x60] sm:$0xf] }
  0x30   : > { %v603_v31 = vsel %vm568_vm2, %v522_v0, 0.0  ;;  %v519_v9 = vmul.f32 %v2778_v1, %v2784_v8  ;;  %v525_v43 = vmul.f32 %v2674_v40, %v276_v17  ;;  %v527_v0 = vmul.f32 %v2696_v53, %v278_v47  ;;  %v2818_v17 = vld [vmem:[%s2629_s18 + $0x68] sm:$0xf] }
  0x31   : > { %v581_v28 = vadd.f32 %v580_v13, %v579_v16  ;;  %v518_v13 = vmul.f32 %v2764_v51, %v2771_v57  ;;  %v592_v16 = vsel %vm568_vm2, %v516_v52, 0.0  ;;  %v607_v55 = vsel %vm568_vm2, %v524_v14, 0.0 }
  0x32   : > { %vm1644_vm13 = vcmask 130112   ;;  %vm1860_vm14 = vcmask 195712   ;;  %vm2076_vm15 = vcmask 261312  }
  0x33   : > { %v583_v37 = vadd.f32 %v582_v20, %v581_v28  ;;  %v600_v20 = vsel %vm568_vm2, %v520_v61, 0.0  ;;  %v601_v28 = vsel %vm568_vm2, %v521_v63, 0.0  ;;  %v596_v46 = vsel %vm568_vm2, %v518_v13, 0.0 }
  0x34   : > { %v602_v38 = vadd.f32 %v601_v28, %v600_v20  ;;  %v528_v13 = vmul.f32 %v2705_v59, %v2807_v60  ;;  %v613_v20 = vsel %vm568_vm2, %v527_v0, 0.0  ;;  %v2824_v28 = vld [vmem:[%s2629_s18 + $0x6c] sm:$0xf] }
  0x35   : > { %v585_v50 = vadd.f32 %v584_v34, %v583_v37  ;;  %v594_v34 = vsel %vm568_vm2, %v517_v3, 0.0  ;;  %v277_v37 = vld [vmem:[%s2629_s18 + $0x58] sm:$0xf]  ;;  %v609_v3 = vsel %vm568_vm2, %v525_v43, 0.0 }
  0x37   : > { %v587_v58 = vadd.f32 %v586_v45, %v585_v50  ;;  %v605_v45 = vsel %vm568_vm2, %v523_v12, 0.0  ;;  %v604_v50 = vadd.f32 %v603_v31, %v602_v38 }
  0x39   : > { %v589_v10 = vadd.f32 %v588_v54, %v587_v58  ;;  %v526_v54 = vmul.f32 %v2683_v44, %v277_v37  ;;  %v598_v58 = vsel %vm568_vm2, %v519_v9, 0.0  ;;  %v606_v61 = vadd.f32 %v605_v45, %v604_v50  ;;  %v2830_v37 = vld [vmem:[%s2629_s18 + $0x70] sm:$0xf]  ;;  %v2836_v45 = vld [vmem:[%s2629_s18 + $0x74] sm:$0xf] }
  0x3a   : > { %v530_v9 = vmul.f32 %v2724_v11, %v2818_v17  ;;  %v532_v47 = vmul.f32 %v2743_v33, %v2830_v37 }
  0x3b   : > { %v591_v19 = vadd.f32 %v590_v5, %v589_v10  ;;  %v2812_v5 = vld [vmem:[%s2629_s18 + $0x64] sm:$0xf]  ;;  %v608_v10 = vadd.f32 %v607_v55, %v606_v61  ;;  %v533_v55 = vmul.f32 %v2753_v41, %v2836_v45  ;;  %v2848_v61 = vld [vmem:[%s2629_s18 + $0x7c] sm:$0xf] }
  0x3c   : > { %v619_v50 = vsel %vm568_vm2, %v530_v9, 0.0  ;;  %3506 = vst [vmem:[#allocation6_spill] sm:$0xff] %v2848_v61 }
  0x3d   : > { %v593_v39 = vadd.f32 %v592_v16, %v591_v19  ;;  %v611_v16 = vsel %vm568_vm2, %v526_v54, 0.0  ;;  %v610_v14 = vadd.f32 %v609_v3, %v608_v10  ;;  %v529_v19 = vmul.f32 %v2714_v2, %v2812_v5  ;;  %v2854_v10 = vld [vmem:[%s2629_s18 + $0x80] sm:$0xf] }
  0x3e   : > { %v623_v3 = vsel %vm568_vm2, %v532_v47, 0.0  ;;  %3507 = vst [vmem:[#allocation7_spill] sm:$0xff] %v2854_v10  ;;  %v536_v9 = vmul.f32 %v2636_v21, %v2854_v10  ;;  %v305_v10 = vld [vmem:[%s2629_s18 + $0xc8] sm:$0xf] }
  0x3f   : > { %v595_v52 = vadd.f32 %v594_v34, %v593_v39  ;;  %v612_v31 = vadd.f32 %v611_v16, %v610_v14  ;;  %v615_v34 = vsel %vm568_vm2, %v528_v13, 0.0  ;;  %v531_v39 = vmul.f32 %v2734_v18, %v2824_v28  ;;  %v2860_v16 = vld [vmem:[%s2629_s18 + $0x88] sm:$0xf] }
  0x40   : > { %v617_v43 = vsel %vm568_vm2, %v529_v19, 0.0  ;;  %3509 = vst [vmem:[#allocation9_spill] sm:$0xff] %v2860_v16  ;;  %v535_v14 = vmul.f32 %v2778_v1, %v2848_v61  ;;  %v625_v19 = vsel %vm568_vm2, %v533_v55, 0.0 }
  0x41   : > { %v597_v63 = vadd.f32 %v596_v46, %v595_v52  ;;  %v614_v38 = vadd.f32 %v613_v20, %v612_v31  ;;  %v2842_v52 = vld [vmem:[%s2629_s18 + $0x78] sm:$0xf]  ;;  %v2866_v20 = vld [vmem:[%s2629_s18 + $0x8c] sm:$0xf] }
  0x42   : > { %v534_v0 = vmul.f32 %v2764_v51, %v2842_v52  ;;  %3510 = vst [vmem:[#allocation10_spill] sm:$0xff] %v2866_v20  ;;  %v539_v47 = vmul.f32 %v2656_v29, %v2866_v20 }
  0x43   : > { %v599_v12 = vadd.f32 %v598_v58, %v597_v63  ;;  %v616_v46 = vadd.f32 %v615_v34, %v614_v38  ;;  %v621_v58 = vsel %vm568_vm2, %v531_v39, 0.0  ;;  %v2874_v39 = vld [vmem:[%s2629_s18 + $0x90] sm:$0xf] }
  0x44   : > { %v627_v38 = vsel %vm568_vm2, %v534_v0, 0.0  ;;  %3511 = vst [vmem:[#allocation11_spill] sm:$0xff] %v2874_v39 }
  0x45   : > { %1205 = vxpose.xlu0.b32.start.end [1/1] (short) (narrow) %v599_v12, 8  ;;  %v618_v54 = vadd.f32 %v617_v43, %v616_v46  ;;  %v2857_v12 = vld [vmem:[%s2629_s18 + $0x84] sm:$0xf]  ;;  %v538_v43 = vmul.f32 %v2642_v23, %v2860_v16 }
  0x46   : > { %3508 = vst [vmem:[#allocation8_spill] sm:$0xff] %v2857_v12  ;;  %v537_v34 = vmul.f32 %v2639_v22, %v2857_v12  ;;  %v304_v12 = vld [vmem:[%s2629_s18 + $0xc4] sm:$0xf] }
  0x47   : > { %v620_v63 = vadd.f32 %v619_v50, %v618_v54  ;;  %v629_v50 = vsel %vm568_vm2, %v535_v14, 0.0  ;;  %v2882_v54 = vld [vmem:[%s2629_s18 + $0x94] sm:$0xf] }
  0x48   : > { %3512 = vst [vmem:[#allocation12_spill] sm:$0xff] %v2882_v54  ;;  %v632_v0 = vsel %vm568_vm2, %v537_v34, 0.0  ;;  %v541_v14 = vmul.f32 %v2674_v40, %v2882_v54  ;;  %v2932_v54 = vld [vmem:[%s2629_s18 + $0xb4] sm:$0xf] }
  0x49   : > { %v622_v13 = vadd.f32 %v621_v58, %v620_v63  ;;  %v540_v58 = vmul.f32 %v2662_v32, %v2874_v39  ;;  %v631_v63 = vsel %vm568_vm2, %v536_v9, 0.0  ;;  %3516 = vst [vmem:[#allocation16_spill] sm:$0xff] %v2932_v54 }
  0x4b   : > { %v624_v31 = vadd.f32 %v623_v3, %v622_v13  ;;  %v2889_v3 = vld [vmem:[%s2629_s18 + $0x98] sm:$0xf]  ;;  %v633_v13 = vadd.f32 %v632_v0, %v631_v63  ;;  %v638_v34 = vsel %vm568_vm2, %v540_v58, 0.0  ;;  %v2902_v63 = vld [vmem:[%s2629_s18 + $0xa0] sm:$0xf] }
  0x4c   : > { %3513 = vst [vmem:[#allocation13_spill] sm:$0xff] %v2889_v3  ;;  %v542_v9 = vmul.f32 %v2683_v44, %v2889_v3  ;;  %v2926_v3 = vld [vmem:[%s2629_s18 + $0xb0] sm:$0xf] }
  0x4d   : > { %v626_v46 = vadd.f32 %v625_v19, %v624_v31  ;;  %v634_v19 = vsel %vm568_vm2, %v538_v43, 0.0  ;;  %3515 = vst [vmem:[#allocation15_spill] sm:$0xff] %v2926_v3 }
  0x4e   : > { %v635_v7 = vadd.f32 %v634_v19, %v633_v13  ;;  %v544_v13 = vmul.f32 %v2705_v59, %v2902_v63  ;;  %v642_v19 = vsel %vm568_vm2, %v542_v9, 0.0 }
  0x4f   : > { %v628_v55 = vadd.f32 %v627_v38, %v626_v46  ;;  %v636_v38 = vsel %vm568_vm2, %v539_v47, 0.0  ;;  %v2896_v46 = vld [vmem:[%s2629_s18 + $0x9c] sm:$0xf]  ;;  %v2908_v47 = vld [vmem:[%s2629_s18 + $0xa4] sm:$0xf] }
  0x50   : > { %3514 = vst [vmem:[#allocation14_spill] sm:$0xff] %v2896_v46  ;;  %v637_v43 = vadd.f32 %v636_v38, %v635_v7  ;;  %v545_v7 = vmul.f32 %v2714_v2, %v2908_v47 }
  0x51   : > { %v630_v31 = vadd.f32 %v629_v50, %v628_v55  ;;  %v543_v50 = vmul.f32 %v2696_v53, %v2896_v46  ;;  %v640_v55 = vsel %vm568_vm2, %v541_v14, 0.0  ;;  %v2920_v46 = vld [vmem:[%s2629_s18 + $0xac] sm:$0xf] }
  0x52   : > { %v639_v0 = vadd.f32 %v638_v34, %v637_v43  ;;  %v646_v43 = vsel %vm568_vm2, %v544_v13, 0.0  ;;  %v2938_v13 = vld [vmem:[%s2629_s18 + $0xb8] sm:$0xf] }
  0x53   : > { %1430 = vxpose.xlu0.b32.start.end [1/1] (short) (narrow) %v630_v31, 8  ;;  %v2914_v31 = vld [vmem:[%s2629_s18 + $0xa8] sm:$0xf]  ;;  %v644_v38 = vsel %vm568_vm2, %v543_v50, 0.0  ;;  %3517 = vst [vmem:[#allocation17_spill] sm:$0xff] %v2938_v13 }
  0x54   : > { %v641_v58 = vadd.f32 %v640_v55, %v639_v0  ;;  %v546_v34 = vmul.f32 %v2724_v11, %v2914_v31  ;;  %v547_v55 = vmul.f32 %v2734_v18, %v2920_v46  ;;  %v648_v0 = vsel %vm568_vm2, %v545_v7, 0.0  ;;  %v2944_v7 = vld [vmem:[%s2629_s18 + $0xbc] sm:$0xf] }
  0x55   : > { %3518 = vst [vmem:[#allocation18_spill] sm:$0xff] %v2944_v7 }
  0x56   : > { %v643_v14 = vadd.f32 %v642_v19, %v641_v58  ;;  %v548_v19 = vmul.f32 %v2743_v33, %v2926_v3  ;;  %v650_v58 = vsel %vm568_vm2, %v546_v34, 0.0  ;;  %v652_v39 = vsel %vm568_vm2, %v547_v55, 0.0  ;;  %v303_v34 = vld [vmem:[%s2629_s18 + $0xc0] sm:$0xf] }
  0x58   : > { %v645_v9 = vadd.f32 %v644_v38, %v643_v14  ;;  %v549_v14 = vmul.f32 %v2753_v41, %v2932_v54 }
  0x5a   : > { %v647_v50 = vadd.f32 %v646_v43, %v645_v9  ;;  %v550_v43 = vmul.f32 %v2764_v51, %v2938_v13  ;;  %v654_v9 = vsel %vm568_vm2, %v548_v19, 0.0  ;;  %v553_v19 = vmul.f32 %v2639_v22, %v304_v12 }
  0x5c   : > { %v649_v38 = vadd.f32 %v648_v0, %v647_v50  ;;  %v551_v0 = vmul.f32 %v2778_v1, %v2944_v7  ;;  %v656_v50 = vsel %vm568_vm2, %v549_v14, 0.0  ;;  %v658_v54 = vsel %vm568_vm2, %v550_v43, 0.0  ;;  %v307_v7 = vld [vmem:[%s2629_s18 + $0xd0] sm:$0xf] }
  0x5d   : > { %v556_v61 = vmul.f32 %v2662_v32, %v307_v7 }
  0x5e   : > { %v651_v20 = vadd.f32 %v650_v58, %v649_v38  ;;  %v306_v58 = vld [vmem:[%s2629_s18 + $0xcc] sm:$0xf]  ;;  %v552_v38 = vmul.f32 %v2636_v21, %v303_v34  ;;  %v663_v21 = vsel %vm568_vm2, %v553_v19, 0.0 }
  0x5f   : > { %v555_v14 = vmul.f32 %v2656_v29, %v306_v58  ;;  %v669_v32 = vsel %vm568_vm2, %v556_v61, 0.0  ;;  %v2985_v58 = vld [vmem:[%s3482_s3] sm:$0xf] }
  0x60   : > { %v653_v16 = vadd.f32 %v652_v39, %v651_v20  ;;  %v554_v20 = vmul.f32 %v2642_v23, %v305_v10  ;;  %v660_v39 = vsel %vm568_vm2, %v551_v0, 0.0  ;;  %v662_v43 = vsel %vm568_vm2, %v552_v38, 0.0  ;;  %v309_v23 = vld [vmem:[%s2629_s18 + $0xd8] sm:$0xf]  ;;  %v2991_v38 = vld [vmem:[%s2629_s18 + $0xe8] sm:$0xf] }
  0x61   : > { %v664_v10 = vadd.f32 %v663_v21, %v662_v43  ;;  %v667_v29 = vsel %vm568_vm2, %v555_v14, 0.0  ;;  %v558_v34 = vmul.f32 %v2683_v44, %v309_v23  ;;  %v2999_v14 = vld [vmem:[%s2629_s18 + $0xec] sm:$0xf]  ;;  %v3009_v21 = vld [vmem:[%s2629_s18 + $0xf0] sm:$0xf] }
  0x62   : > { %v655_v55 = vadd.f32 %v654_v9, %v653_v16  ;;  %v308_v16 = vld [vmem:[%s2629_s18 + $0xd4] sm:$0xf]  ;;  %v665_v22 = vsel %vm568_vm2, %v554_v20, 0.0  ;;  %v563_v23 = vmul.f32 %v2734_v18, %v2999_v14 }
  0x63   : > { %v557_v12 = vmul.f32 %v2674_v40, %v308_v16  ;;  %v673_v61 = vsel %vm568_vm2, %v558_v34, 0.0 }
  0x64   : > { %v657_v13 = vadd.f32 %v656_v50, %v655_v55  ;;  %v2980_v55 = vld [vmem:[%s2629_s18 + $0xe4] sm:$0xf] }
  0x65   : > { %v671_v50 = vsel %vm568_vm2, %v557_v12, 0.0  ;;  %v3020_v12 = vld [vmem:[%s2629_s18 + $0xf4] sm:$0xf] }
  0x66   : > { %v659_v3 = vadd.f32 %v658_v54, %v657_v13  ;;  %v310_v54 = vld [vmem:[%s2629_s18 + $0xdc] sm:$0xf]  ;;  %v666_v13 = vadd.f32 %v665_v22, %v664_v10  ;;  %v705_v10 = vmul.f32 %v2985_v58, %v2749_v35 }
  0x67   : > { %v559_v0 = vmul.f32 %v2696_v53, %v310_v54  ;;  %v561_v53 = vmul.f32 %v2714_v2, %v2980_v55  ;;  %v703_v2 = vmul.f32 %v2985_v58, %v2730_v15 }
  0x68   : > { %v661_v9 = vadd.f32 %v660_v39, %v659_v3  ;;  %v2975_v3 = vld [vmem:[%s2629_s18 + $0xe0] sm:$0xf]  ;;  %v668_v7 = vadd.f32 %v667_v29, %v666_v13  ;;  %v702_v39 = vmul.f32 %v2985_v58, %v2720_v6  ;;  %v704_v6 = vmul.f32 %v2985_v58, %v2740_v27  ;;  %v3028_v13 = vld [vmem:[%s2629_s18 + $0xf8] sm:$0xf] }
  0x69   : > { %v560_v44 = vmul.f32 %v2705_v59, %v2975_v3  ;;  %v675_v20 = vsel %vm568_vm2, %v559_v0, 0.0  ;;  %v562_v59 = vmul.f32 %v2724_v11, %v2991_v38  ;;  %v679_v11 = vsel %vm568_vm2, %v561_v53, 0.0 }
  0x6a   : > { %1646 = vxpose.xlu1.b32.start.end [1/1] (short) (narrow) %v661_v9, 8  ;;  %v670_v40 = vadd.f32 %v669_v32, %v668_v7  ;;  %v701_v9 = vmul.f32 %v2985_v58, %v2711_v62  ;;  %v820_v62 = vsel %vm568_vm2, %v702_v39, 0.0  ;;  %v564_v29 = vmul.f32 %v2743_v33, %v3009_v21 }
  0x6b   : > { %v677_v43 = vsel %vm568_vm2, %v560_v44, 0.0  ;;  %v681_v54 = vsel %vm568_vm2, %v562_v59, 0.0  ;;  %v827_v18 = vsel %vm568_vm2, %v703_v2, 0.0  ;;  %v821_v32 = vrot.slane %v820_v62, 4 }
  0x6c   : > { %v672_v19 = vadd.f32 %v671_v50, %v670_v40  ;;  %v813_v27 = vsel %vm568_vm2, %v701_v9, 0.0  ;;  %v834_v35 = vsel %vm568_vm2, %v704_v6, 0.0  ;;  %v565_v7 = vmul.f32 %v2753_v41, %v3020_v12  ;;  %v3038_v40 = vld [vmem:[%s2629_s18 + $0xfc] sm:$0xf] }
  0x6d   : > { %v683_v0 = vsel %vm568_vm2, %v563_v23, 0.0  ;;  %v706_v33 = vmul.f32 %v2985_v58, %v2761_v48  ;;  %v841_v50 = vsel %vm568_vm2, %v705_v10, 0.0  ;;  %v566_v53 = vmul.f32 %v2764_v51, %v3028_v13 }
  0x6e   : > { %v674_v16 = vadd.f32 %v673_v61, %v672_v19  ;;  %v707_v61 = vmul.f32 %v2985_v58, %v2771_v57  ;;  %v708_v19 = vmul.f32 %v2985_v58, %v2784_v8  ;;  %v685_v41 = vsel %vm568_vm2, %v564_v29, 0.0 }
  0x6f   : > { %v828_v39 = vrot.slane %v827_v18, 4  ;;  %v822_v59 = vadd.f32 %v821_v32, %v820_v62  ;;  %v567_v9 = vmul.f32 %v2778_v1, %v3038_v40  ;;  %v687_v2 = vsel %vm568_vm2, %v565_v7, 0.0 }
  0x70   : > { %v676_v22 = vadd.f32 %v675_v20, %v674_v16  ;;  %v814_v20 = vrot.slane %v813_v27, 4  ;;  %v835_v16 = vrot.slane %v834_v35, 4  ;;  %v855_v8 = vsel %vm568_vm2, %v707_v61, 0.0 }
  0x71   : > { %v862_v51 = vsel %vm568_vm2, %v708_v19, 0.0  ;;  %v689_v6 = vsel %vm568_vm2, %v566_v53, 0.0  ;;  %v823_v62 = vrot.slane %v822_v59, 2  ;;  %v691_v29 = vsel %vm568_vm2, %v567_v9, 0.0 }
  0x72   : > { %v678_v15 = vadd.f32 %v677_v43, %v676_v22  ;;  %v842_v43 = vrot.slane %v841_v50, 4  ;;  %v848_v22 = vsel %vm568_vm2, %v706_v33, 0.0  ;;  %v3054_v23 = vadd.f32 %v814_v20, %v813_v27 }
  0x73   : > { %v863_v32 = vrot.slane %v862_v51, 4  ;;  %v3067_v61 = vadd.f32 %v823_v62, %v822_v59  ;;  %v693_v53 = vmul.f32 %v2985_v58, %v2645_v24  ;;  %v695_v20 = vmul.f32 %v2985_v58, %v2651_v26 }
  0x74   : > { %v680_v34 = vadd.f32 %v679_v11, %v678_v15  ;;  %v3056_v11 = vadd.f32 %v828_v39, %v827_v18  ;;  %v3058_v15 = vadd.f32 %v835_v16, %v834_v35  ;;  %v3060_v1 = vadd.f32 %v842_v43, %v841_v50 }
  0x75   : > { %v3073_v19 = vadd.f32 %v863_v32, %v862_v51  ;;  %v3501_v39 = vmov 0.0|0.0   ;;  %v696_v16 = vmul.f32 %v2985_v58, %v2659_v30  ;;  %v698_v59 = vmul.f32 %v2985_v58, %v2679_v42 }
  0x76   : > { %v682_v44 = vadd.f32 %v681_v54, %v680_v34  ;;  %v849_v54 = vrot.slane %v848_v22, 4  ;;  %v856_v34 = vrot.slane %v855_v8, 4  ;;  %v830_v27 = vrot.slane %v3056_v11, 2  ;;  %2355 = vmatprep.subr.bf16.mxu1 %v3501_v39 }
  0x77   : > { %v699_v24 = vmul.f32 %v2985_v58, %v2691_v49  ;;  %v757_v26 = vsel %vm568_vm2, %v693_v53, 0.0  ;;  %v771_v9 = vsel %vm568_vm2, %v695_v20, 0.0 }
  0x78   : > { %v684_v48 = vadd.f32 %v683_v0, %v682_v44  ;;  %v3069_v35 = vadd.f32 %v849_v54, %v848_v22  ;;  %v3071_v50 = vadd.f32 %v856_v34, %v855_v8  ;;  %v792_v8 = vsel %vm568_vm2, %v698_v59, 0.0 }
  0x79   : > { %v799_v49 = vsel %vm568_vm2, %v699_v24, 0.0 }
  0x7a   : > { %v686_v57 = vadd.f32 %v685_v41, %v684_v48  ;;  %v694_v41 = vmul.f32 %v2985_v58, %v2648_v25  ;;  %v697_v48 = vmul.f32 %v2985_v58, %v2671_v36  ;;  %v700_v25 = vmul.f32 %v2985_v58, %v2702_v56 }
  0x7b   : > { %v778_v36 = vsel %vm568_vm2, %v696_v16, 0.0  ;;  %v800_v54 = vrot.slane %v799_v49, 4 }
  0x7c   : > { %v688_v10 = vadd.f32 %v687_v2, %v686_v57  ;;  %v764_v43 = vsel %vm568_vm2, %v694_v41, 0.0  ;;  %v758_v2 = vrot.slane %v757_v26, 4  ;;  %v772_v57 = vrot.slane %v771_v9, 4 }
  0x7d   : > { %v765_v30 = vrot.slane %v764_v43, 4  ;;  %v779_v22 = vrot.slane %v778_v36, 4  ;;  %v785_v42 = vsel %vm568_vm2, %v697_v48, 0.0  ;;  %v806_v34 = vsel %vm568_vm2, %v700_v25, 0.0 }
  0x7e   : > { %v690_v7 = vadd.f32 %v689_v6, %v688_v10  ;;  %v759_v51 = vadd.f32 %v758_v2, %v757_v26  ;;  %v773_v6 = vadd.f32 %v772_v57, %v771_v9  ;;  %v786_v10 = vrot.slane %v785_v42, 4 }
  0x7f   : > { %v766_v56 = vadd.f32 %v765_v30, %v764_v43  ;;  %v780_v62 = vadd.f32 %v779_v22, %v778_v36  ;;  %v801_v16 = vadd.f32 %v800_v54, %v799_v49  ;;  %v807_v48 = vrot.slane %v806_v34, 4 }
  0x80   : > { %v692_v0 = vadd.f32 %v691_v29, %v690_v7  ;;  %v793_v29 = vrot.slane %v792_v8, 4  ;;  %v760_v32 = vrot.slane %v759_v51, 2  ;;  %v787_v53 = vadd.f32 %v786_v10, %v785_v42 }
  0x81   : > { %v767_v7 = vrot.slane %v766_v56, 2  ;;  %v781_v41 = vrot.slane %v780_v62, 2  ;;  %v802_v2 = vrot.slane %v801_v16, 2  ;;  %v808_v30 = vadd.f32 %v807_v48, %v806_v34 }
  0x82   : > { %1862 = vxpose.xlu1.b32.start.end [1/1] (short) (narrow) %v692_v0, 8  ;;  %v774_v0 = vrot.slane %v773_v6, 2  ;;  %v794_v20 = vadd.f32 %v793_v29, %v792_v8  ;;  %v761_v59 = vadd.f32 %v760_v32, %v759_v51  ;;  %v788_v26 = vrot.slane %v787_v53, 2 }
  0x83   : > { %v768_v39 = vadd.f32 %v767_v7, %v766_v56  ;;  %v782_v43 = vadd.f32 %v781_v41, %v780_v62  ;;  %v803_v33 = vadd.f32 %v802_v2, %v801_v16  ;;  %v809_v42 = vrot.slane %v808_v30, 2 }
  0x84   : > { %v775_v24 = vadd.f32 %v774_v0, %v773_v6  ;;  %v795_v9 = vrot.slane %v794_v20, 2  ;;  %v762_v57 = vrot.slane %v761_v59, 1  ;;  %v789_v25 = vadd.f32 %v788_v26, %v787_v53 }
  0x85   : > { %v769_v36 = vrot.slane %v768_v39, 1  ;;  %v783_v44 = vrot.slane %v782_v43, 1  ;;  %v831_v8 = vadd.f32 %v830_v27, %v3056_v11  ;;  %v851_v49 = vrot.slane %v3069_v35, 2 }
  0x86   : > { %v776_v22 = vrot.slane %v775_v24, 1  ;;  %v796_v18 = vadd.f32 %v795_v9, %v794_v20  ;;  %v858_v51 = vrot.slane %v3071_v50, 2  ;;  %v790_v56 = vrot.slane %v789_v25, 1 }
  0x87   : > { %v865_v6 = vrot.slane %v3073_v19, 2  ;;  %v763_v10 = vadd.f32 %v762_v57, %v761_v59  ;;  %v804_v29 = vrot.slane %v803_v33, 1  ;;  %v770_v54 = vadd.f32 %v769_v36, %v768_v39 }
  0x88   : > { %v797_v62 = vrot.slane %v796_v18, 1  ;;  %v777_v34 = vadd.f32 %v776_v22, %v775_v24  ;;  %v810_v32 = vadd.f32 %v809_v42, %v808_v30  ;;  %v3519_v7 = vrot.slane %v3054_v23, 2 }
  0x89   : > { %v784_v53 = vadd.f32 %v783_v44, %v782_v43  ;;  %v791_v41 = vadd.f32 %v790_v56, %v789_v25  ;;  %v825_v11 = vrot.slane %v3067_v61, 1  ;;  %v3520_v27 = vrot.slane %v3058_v15, 2 }
  0x8a   : > { %v817_v0 = vadd.f32 %v3519_v7, %v3054_v23  ;;  %v798_v16 = vadd.f32 %v797_v62, %v796_v18  ;;  %v832_v59 = vrot.slane %v831_v8, 1  ;;  %v3521_v39 = vrot.slane %v3060_v1, 2 }
  0x8b   : > { %v838_v20 = vadd.f32 %v3520_v27, %v3058_v15  ;;  %v805_v26 = vadd.f32 %v804_v29, %v803_v33  ;;  %v852_v2 = vadd.f32 %v851_v49, %v3069_v35  ;;  %v859_v23 = vadd.f32 %v858_v51, %v3071_v50 }
  0x8c   : > { %v818_v48 = vrot.slane %v817_v0, 1  ;;  %v845_v24 = vadd.f32 %v3521_v39, %v3060_v1  ;;  %v811_v44 = vrot.slane %v810_v32, 1  ;;  %v866_v30 = vadd.f32 %v865_v6, %v3073_v19 }
  0x8d   : > { %v839_v9 = vrot.slane %v838_v20, 1  ;;  %v826_v15 = vadd.f32 %v825_v11, %v3067_v61  ;;  %v853_v18 = vrot.slane %v852_v2, 1  ;;  %v1332_v36 = vsel %vm1331_vm3, %v770_v54, %v763_v10 }
  0x8e   : > { %v846_v43 = vrot.slane %v845_v24, 1  ;;  %v819_v57 = vadd.f32 %v818_v48, %v817_v0  ;;  %v833_v22 = vadd.f32 %v832_v59, %v831_v8  ;;  %v860_v25 = vrot.slane %v859_v23, 1 }
  0x8f   : > { %v840_v1 = vadd.f32 %v839_v9, %v838_v20  ;;  %v867_v33 = vrot.slane %v866_v30, 1  ;;  %v1334_v35 = vsel %vm1333_vm4, %v777_v34, %v1332_v36  ;;  %v812_v19 = vadd.f32 %v811_v44, %v810_v32 }
  0x90   : > { %v847_v50 = vadd.f32 %v846_v43, %v845_v24  ;;  %v1336_v42 = vsel %vm1335_vm5, %v784_v53, %v1334_v35  ;;  %v854_v49 = vadd.f32 %v853_v18, %v852_v2  ;;  %v1345_v51 = vsel %vm1331_vm3, %v826_v15, %v819_v57  ;;  %v3524_v43 = vld [vmem:[#allocation6_spill] sm:$0xff]  ;;  %v3525_v57 = vld [vmem:[#allocation15_spill] sm:$0xff]  ;;  %v3526_v18 = vld [vmem:[#allocation16_spill] sm:$0xff] }
  0x91   : > { %v1338_v61 = vsel %vm1337_vm6, %v791_v41, %v1336_v42  ;;  %v861_v8 = vadd.f32 %v860_v25, %v859_v23  ;;  %v1346_v6 = vsel %vm1333_vm4, %v833_v22, %v1345_v51  ;;  %v868_v10 = vadd.f32 %v867_v33, %v866_v30 }
  0x92   : > { %v1340_v56 = vsel %vm1339_vm7, %v798_v16, %v1338_v61  ;;  %v1347_v29 = vsel %vm1335_vm5, %v840_v1, %v1346_v6  ;;  %v3522_v41 = vmov 0.0|0.0   ;;  %v3523_v27 = vmov 0.0  }
  0x93   : > { %v1342_v62 = vsel %vm1341_vm8, %v805_v26, %v1340_v56  ;;  %v1348_v54 = vsel %vm1337_vm6, %v847_v50, %v1347_v29  ;;  %v718_v48 = vmul.f32 %v2985_v58, %v2812_v5  ;;  %v719_v59 = vmul.f32 %v2985_v58, %v2818_v17 }
  0x94   : > { %v1344_v34 = vsel %vm1343_vm9, %v812_v19, %v1342_v62  ;;  %v1349_v32 = vsel %vm1339_vm7, %v854_v49, %v1348_v54  ;;  %v717_v39 = vmul.f32 %v2985_v58, %v2807_v60  ;;  %v720_v24 = vmul.f32 %v2985_v58, %v2824_v28 }
  0x95   : > { %v1350_v7 = vsel %vm1341_vm8, %v861_v8, %v1349_v32  ;;  %v932_v26 = vsel %vm568_vm2, %v718_v48, 0.0  ;;  %v722_v9 = vmul.f32 %v2985_v58, %v2836_v45  ;;  %v939_v2 = vsel %vm568_vm2, %v719_v59, 0.0 }
  0x96   : > { %v1351_v0 = vsel %vm1343_vm9, %v868_v10, %v1350_v7  ;;  %v723_v5 = vmul.f32 %v2985_v58, %v2842_v52  ;;  %v925_v17 = vsel %vm568_vm2, %v717_v39, 0.0  ;;  %v933_v23 = vrot.slane %v932_v26, 4 }
  0x97   : > { %v2356_v53 = vpack.c.bf16 %v1351_v0, %v1344_v34  ;;  %v946_v60 = vsel %vm568_vm2, %v720_v24, 0.0  ;;  %v733_v28 = vmul.f32 %v2985_v58, %v2902_v63  ;;  %v734_v44 = vmul.f32 %v2985_v58, %v2908_v47  ;;  %v3527_v47 = vld [vmem:[#allocation17_spill] sm:$0xff] }
  0x98   : > { %v736_v45 = vmul.f32 %v2985_v58, %v2920_v46  ;;  %v724_v52 = vmul.f32 %v2985_v58, %v3524_v43  ;;  %v940_v30 = vrot.slane %v939_v2, 4  ;;  %v737_v15 = vmul.f32 %v2985_v58, %v3525_v57 }
  0x99   : > { %2357 = vmatpush3.bf16.msra.mxu1 %v2356_v53  ;;  %v738_v36 = vmul.f32 %v2985_v58, %v3526_v18  ;;  %v926_v63 = vrot.slane %v925_v17, 4  ;;  %v739_v25 = vmul.f32 %v2985_v58, %v3527_v47  ;;  %v934_v46 = vadd.f32 %v933_v23, %v932_v26 }
  0x9a   : > { %2358 = vmatprep.subr.bf16.mxu1 %v3522_v41  ;;  %v947_v33 = vrot.slane %v946_v60, 4  ;;  %v960_v35 = vsel %vm568_vm2, %v722_v9, 0.0  ;;  %v967_v50 = vsel %vm568_vm2, %v723_v5, 0.0  ;;  %v1037_v19 = vsel %vm568_vm2, %v733_v28, 0.0 }
  0x9b   : > { %v1044_v49 = vsel %vm568_vm2, %v734_v44, 0.0  ;;  %v1058_v51 = vsel %vm568_vm2, %v736_v45, 0.0  ;;  %v941_v8 = vadd.f32 %v940_v30, %v939_v2  ;;  %v1065_v6 = vsel %vm568_vm2, %v737_v15, 0.0 }
  0x9c   : > { %v1072_v10 = vsel %vm568_vm2, %v738_v36, 0.0  ;;  %v961_v62 = vrot.slane %v960_v35, 4  ;;  %v974_v29 = vsel %vm568_vm2, %v724_v52, 0.0  ;;  %v1079_v54 = vsel %vm568_vm2, %v739_v25, 0.0 }
  0x9d   : > { %v1038_v32 = vrot.slane %v1037_v19, 4  ;;  %v1045_v7 = vrot.slane %v1044_v49, 4  ;;  %v1059_v53 = vrot.slane %v1058_v51, 4  ;;  %v1073_v48 = vrot.slane %v1072_v10, 4 }
  0x9e   : > { %v975_v39 = vrot.slane %v974_v29, 4  ;;  %v1080_v24 = vrot.slane %v1079_v54, 4  ;;  %v935_v9 = vrot.slane %v934_v46, 2  ;;  %v942_v2 = vrot.slane %v941_v8, 2 }
  0x9f   : > { %v962_v5 = vadd.f32 %v961_v62, %v960_v35  ;;  %v1039_v23 = vadd.f32 %v1038_v32, %v1037_v19  ;;  %v1046_v28 = vadd.f32 %v1045_v7, %v1044_v49  ;;  %v1074_v30 = vadd.f32 %v1073_v48, %v1072_v10 }
  0xa0   : > { %v976_v57 = vadd.f32 %v975_v39, %v974_v29  ;;  %v1081_v15 = vadd.f32 %v1080_v24, %v1079_v54  ;;  %v943_v47 = vadd.f32 %v942_v2, %v941_v8 }
  0xa1   : > { %v963_v25 = vrot.slane %v962_v5, 2  ;;  %v1075_v19 = vrot.slane %v1074_v30, 2 }
  0xa2   : > { %v944_v10 = vrot.slane %v943_v47, 1 }
  0xa3   : > { %v964_v62 = vadd.f32 %v963_v25, %v962_v5 }
  0xa4   : > { %v945_v39 = vadd.f32 %v944_v10, %v943_v47  ;;  %v3235_v10 = vmul.f32 %v2985_v58, %v2991_v38 }
  0xa5   : > { %v965_v24 = vrot.slane %v964_v62, 1 }
  0xc5   : > { %v1221_v11 = vpop.trf.xlu0 }
  0xc6   : > { %2305 = vmatmul.mubr.msk.f32.vlgmr.msra.gmra.mrb[0].mxu0 %vm1237_vm10, %v1221_v11  ;;  %v948_v11 = vadd.f32 %v947_v33, %v946_v60 }
  0xc7   : > { %2315 = vmatpush3.msk.msra.mxu0 %vm1241_vm0, %v2603_v4  ;;  %2316 = vmatprep.mubr.msk.f32.mxu0 %vm2506_vm1, %v3523_v27 }
  0xc8   : > { %2326 = vmatprep.subr.mxu0 %v3523_v27  ;;  %v949_v45 = vrot.slane %v948_v11, 2 }
  0xca   : > { %v950_v33 = vadd.f32 %v949_v45, %v948_v11 }
  0xd3   : > { %v1446_v20 = vpop.trf.xlu0 }
  0xd4   : > { %2317 = vmatmul.mubr.msk.f32.vlgmr.msra.gmra.mrb[2].mxu0 %vm1237_vm10, %v1446_v20  ;;  %v968_v20 = vrot.slane %v967_v50, 4 }
  0xd5   : > { %2327 = vmatpush3.msk.msra.mxu0 %vm1241_vm0, %v2603_v4  ;;  %2328 = vmatprep.mubr.msk.f32.mxu0 %vm2506_vm1, %v3523_v27 }
  0xd6   : > { %2338 = vmatprep.subr.mxu0 %v3523_v27  ;;  %v969_v43 = vadd.f32 %v968_v20, %v967_v50  ;;  %v977_v50 = vrot.slane %v976_v57, 2 }
  0xd8   : > { %v970_v35 = vrot.slane %v969_v43, 2  ;;  %v978_v11 = vadd.f32 %v977_v50, %v976_v57  ;;  %v3530_v57 = vld [vmem:[#allocation8_spill] sm:$0xff] }
  0xda   : > { %v971_v32 = vadd.f32 %v970_v35, %v969_v43  ;;  %v979_v45 = vrot.slane %v978_v11, 1 }
  0xea   : > { %v1662_v16 = vpop.trf.xlu1 }
  0xeb   : > { %2329 = vmatmul.mubr.msk.f32.vlgmr.msra.gmra.mrb[4].mxu0 %vm1237_vm10, %v1662_v16  ;;  %v1066_v16 = vrot.slane %v1065_v6, 4 }
  0xec   : > { %2339 = vmatpush3.msk.msra.mxu0 %vm1241_vm0, %v2603_v4  ;;  %2340 = vmatprep.mubr.msk.f32.mxu0 %vm2506_vm1, %v3523_v27  ;;  %v721_v4 = vmul.f32 %v2985_v58, %v2830_v37  ;;  %v735_v37 = vmul.f32 %v2985_v58, %v2914_v31  ;;  %v3528_v31 = vld [vmem:[#allocation18_spill] sm:$0xff]  ;;  %vm2159_vm0 = vcmask 261120  }
  0xed   : > { %2350 = vmatprep.subr.mxu0 %v3523_v27  ;;  %v740_v1 = vmul.f32 %v2985_v58, %v3528_v31  ;;  %v1067_v52 = vadd.f32 %v1066_v16, %v1065_v6 }
  0xee   : > { %v953_v22 = vsel %vm568_vm2, %v721_v4, 0.0  ;;  %v1051_v61 = vsel %vm568_vm2, %v735_v37, 0.0  ;;  %v927_v4 = vadd.f32 %v926_v63, %v925_v17  ;;  %v1060_v37 = vadd.f32 %v1059_v53, %v1058_v51 }
  0xef   : > { %v954_v56 = vrot.slane %v953_v22, 4  ;;  %v1086_v34 = vsel %vm568_vm2, %v740_v1, 0.0  ;;  %v1052_v0 = vrot.slane %v1051_v61, 4  ;;  %v1040_v17 = vrot.slane %v1039_v23, 2 }
  0xf0   : > { %v1087_v26 = vrot.slane %v1086_v34, 4  ;;  %v928_v36 = vrot.slane %v927_v4, 2  ;;  %v1047_v63 = vrot.slane %v1046_v28, 2  ;;  %v1061_v1 = vrot.slane %v1060_v37, 2 }
  0xf1   : > { %v955_v59 = vadd.f32 %v954_v56, %v953_v22  ;;  %v1053_v44 = vadd.f32 %v1052_v0, %v1051_v61  ;;  %v936_v22 = vadd.f32 %v935_v9, %v934_v46  ;;  %v1082_v61 = vrot.slane %v1081_v15, 2 }
  0xf2   : > { %v1088_v18 = vadd.f32 %v1087_v26, %v1086_v34  ;;  %v929_v56 = vadd.f32 %v928_v36, %v927_v4  ;;  %v1041_v29 = vadd.f32 %v1040_v17, %v1039_v23  ;;  %v1048_v46 = vadd.f32 %v1047_v63, %v1046_v28 }
  0xf3   : > { %v956_v60 = vrot.slane %v955_v59, 2  ;;  %v1054_v31 = vrot.slane %v1053_v44, 2  ;;  %v937_v6 = vrot.slane %v936_v22, 1  ;;  %v1062_v54 = vadd.f32 %v1061_v1, %v1060_v37 }
  0xf4   : > { %v1089_v51 = vrot.slane %v1088_v18, 2  ;;  %v951_v34 = vrot.slane %v950_v33, 1  ;;  %v1076_v0 = vadd.f32 %v1075_v19, %v1074_v30  ;;  %v1083_v20 = vadd.f32 %v1082_v61, %v1081_v15  ;;  %v3529_v30 = vld [vmem:[#allocation7_spill] sm:$0xff] }
  0xf5   : > { %v957_v49 = vadd.f32 %v956_v60, %v955_v59  ;;  %v1055_v8 = vadd.f32 %v1054_v31, %v1053_v44  ;;  %v930_v48 = vrot.slane %v929_v56, 1  ;;  %v938_v59 = vadd.f32 %v937_v6, %v936_v22 }
  0xf6   : > { %v1090_v16 = vadd.f32 %v1089_v51, %v1088_v18  ;;  %v1042_v26 = vrot.slane %v1041_v29, 1  ;;  %v1049_v4 = vrot.slane %v1048_v46, 1  ;;  %v1063_v2 = vrot.slane %v1062_v54, 1  ;;  %v3531_v18 = vld [vmem:[#allocation9_spill] sm:$0xff] }
  0xf7   : > { %v958_v53 = vrot.slane %v957_v49, 1  ;;  %v1056_v9 = vrot.slane %v1055_v8, 1  ;;  %v952_v5 = vadd.f32 %v951_v34, %v950_v33  ;;  %v972_v23 = vrot.slane %v971_v32, 1 }
  0xf8   : > { %v1077_v44 = vrot.slane %v1076_v0, 1  ;;  %v1084_v43 = vrot.slane %v1083_v20, 1  ;;  %v725_v60 = vmul.f32 %v2985_v58, %v3529_v30  ;;  %v726_v15 = vmul.f32 %v2985_v58, %v3530_v57 }
  0xf9   : > { %v959_v37 = vadd.f32 %v958_v53, %v957_v49  ;;  %v727_v36 = vmul.f32 %v2985_v58, %v3531_v18  ;;  %v931_v22 = vadd.f32 %v930_v48, %v929_v56  ;;  %v3208_v47 = vadd.f32 %v1042_v26, %v1041_v29 }
  0xfa   : > { %v3210_v25 = vadd.f32 %v1049_v4, %v1048_v46  ;;  %v3212_v17 = vadd.f32 %v1056_v9, %v1055_v8  ;;  %v3214_v63 = vadd.f32 %v1063_v2, %v1062_v54  ;;  %v3218_v1 = vadd.f32 %v1077_v44, %v1076_v0  ;;  %v3532_v8 = vld [vmem:[#allocation10_spill] sm:$0xff]  ;;  %v3533_v54 = vld [vmem:[#allocation11_spill] sm:$0xff] }
  0xfb   : > { %v966_v33 = vadd.f32 %v965_v24, %v964_v62  ;;  %v1558_v35 = vsel %vm1331_vm3, %v938_v59, %v931_v22  ;;  %v973_v49 = vadd.f32 %v972_v23, %v971_v32  ;;  %v3228_v61 = vmul.f32 %v2985_v58, %v2975_v3 }
  0xfc   : > { %v1559_v50 = vsel %vm1333_vm4, %v945_v39, %v1558_v35  ;;  %v750_v51 = vmul.f32 %v2985_v58, %v2980_v55  ;;  %v980_v56 = vadd.f32 %v979_v45, %v978_v11  ;;  %v3239_v62 = vmul.f32 %v2985_v58, %v2999_v14  ;;  %v3535_v11 = vld [vmem:[#allocation13_spill] sm:$0xff] }
  0xfd   : > { %v1560_v6 = vsel %vm1335_vm5, %v952_v5, %v1559_v50  ;;  %v3243_v29 = vmul.f32 %v2985_v58, %v3009_v21  ;;  %v3248_v55 = vmul.f32 %v2985_v58, %v3020_v12  ;;  %v728_v38 = vmul.f32 %v2985_v58, %v3532_v8  ;;  %v3534_v12 = vld [vmem:[#allocation12_spill] sm:$0xff] }
  0xfe   : > { %v1561_v3 = vsel %vm1337_vm6, %v959_v37, %v1560_v6  ;;  %v729_v34 = vmul.f32 %v2985_v58, %v3533_v54  ;;  %v3257_v14 = vmul.f32 %v2985_v58, %v3028_v13  ;;  %v3261_v21 = vmul.f32 %v2985_v58, %v3038_v40 }
  0xff   : > { %v1562_v46 = vsel %vm1339_vm7, %v966_v33, %v1561_v3  ;;  %v3267_v0 = vsel %vm568_vm2, %v750_v51, 0.0  ;;  %v981_v13 = vsel %vm568_vm2, %v725_v60, 0.0  ;;  %v988_v59 = vsel %vm568_vm2, %v726_v15, 0.0 }
 0x100   : > { %v1563_v32 = vsel %vm1341_vm8, %v973_v49, %v1562_v46  ;;  %v982_v48 = vrot.slane %v981_v13, 4  ;;  %v995_v39 = vsel %vm568_vm2, %v727_v36, 0.0  ;;  %v989_v24 = vrot.slane %v988_v59, 4 }
 0x101   : > { %v3270_v53 = vsel %vm1343_vm9, %v980_v56, %v1563_v32  ;;  %v996_v26 = vrot.slane %v995_v39, 4  ;;  %v1002_v4 = vsel %vm568_vm2, %v728_v38, 0.0  ;;  %v1009_v9 = vsel %vm568_vm2, %v729_v34, 0.0 }
 0x102   : > { %v1878_v42 = vpop.trf.xlu1  ;;  %v983_v2 = vadd.f32 %v982_v48, %v981_v13  ;;  %v1003_v5 = vrot.slane %v1002_v4, 4  ;;  %v1010_v23 = vrot.slane %v1009_v9, 4  ;;  %v990_v44 = vadd.f32 %v989_v24, %v988_v59 }
 0x103   : > { %2341 = vmatmul.mubr.msk.f32.vlgmr.msra.gmra.mrb[6].mxu0 %vm1237_vm10, %v1878_v42  ;;  %v1068_v42 = vrot.slane %v1067_v52, 2  ;;  %v997_v37 = vadd.f32 %v996_v26, %v995_v39 }
 0x104   : > { %2352 = vmatprep.mubr.msk.f32.mxu0 %vm2506_vm1, %v3523_v27  ;;  %v1004_v30 = vadd.f32 %v1003_v5, %v1002_v4  ;;  %v1011_v60 = vadd.f32 %v1010_v23, %v1009_v9  ;;  %v991_v15 = vrot.slane %v990_v44, 2  ;;  %v1774_v9 = vsel %vm1331_vm3, %v3210_v25, %v3208_v47 }
 0x105   : > { %v1069_v7 = vadd.f32 %v1068_v42, %v1067_v52  ;;  %v1091_v52 = vrot.slane %v1090_v16, 1  ;;  %v3221_v42 = vadd.f32 %v1084_v43, %v1083_v20  ;;  %v731_v20 = vmul.f32 %v2985_v58, %v3535_v11 }
 0x106   : > { %v998_v18 = vrot.slane %v997_v37, 2  ;;  %v1005_v35 = vrot.slane %v1004_v30, 2  ;;  %v1012_v49 = vrot.slane %v1011_v60, 2  ;;  %v992_v51 = vadd.f32 %v991_v15, %v990_v44 }
 0x107   : > { %v1070_v28 = vrot.slane %v1069_v7, 1  ;;  %v3223_v19 = vadd.f32 %v1091_v52, %v1090_v16  ;;  %v3536_v16 = vld [vmem:[#allocation14_spill] sm:$0xff]  ;;  %v1023_v43 = vsel %vm568_vm2, %v731_v20, 0.0  ;;  %v984_v52 = vrot.slane %v983_v2, 2 }
 0x108   : > { %v732_v40 = vmul.f32 %v2985_v58, %v3536_v16  ;;  %v1024_v57 = vrot.slane %v1023_v43, 4  ;;  %v999_v56 = vadd.f32 %v998_v18, %v997_v37  ;;  %v1006_v8 = vadd.f32 %v1005_v35, %v1004_v30 }
 0x109   : > { %v3216_v31 = vadd.f32 %v1070_v28, %v1069_v7  ;;  %v730_v7 = vmul.f32 %v2985_v58, %v3534_v12  ;;  %v985_v33 = vadd.f32 %v984_v52, %v983_v2  ;;  %v1013_v38 = vadd.f32 %v1012_v49, %v1011_v60 }
 0x10a   : > { %v1030_v22 = vsel %vm568_vm2, %v732_v40, 0.0  ;;  %v1025_v50 = vadd.f32 %v1024_v57, %v1023_v43  ;;  %v993_v34 = vrot.slane %v992_v51, 1  ;;  %v1000_v32 = vrot.slane %v999_v56, 1 }
 0x10b   : > { %v1016_v28 = vsel %vm568_vm2, %v730_v7, 0.0  ;;  %v1031_v3 = vrot.slane %v1030_v22, 4  ;;  %v986_v46 = vrot.slane %v985_v33, 1  ;;  %v1007_v20 = vrot.slane %v1006_v8, 1 }
 0x10c   : > { %v1017_v45 = vrot.slane %v1016_v28, 4  ;;  %v1026_v54 = vrot.slane %v1025_v50, 2  ;;  %v1014_v13 = vrot.slane %v1013_v38, 1  ;;  %v994_v40 = vadd.f32 %v993_v34, %v992_v51 }
 0x10d   : > { %v1032_v7 = vadd.f32 %v1031_v3, %v1030_v22  ;;  %v987_v11 = vadd.f32 %v986_v46, %v985_v33  ;;  %v1001_v48 = vadd.f32 %v1000_v32, %v999_v56  ;;  %v1008_v24 = vadd.f32 %v1007_v20, %v1006_v8 }
 0x10e   : > { %v1018_v36 = vadd.f32 %v1017_v45, %v1016_v28  ;;  %v1027_v16 = vadd.f32 %v1026_v54, %v1025_v50  ;;  %v1015_v26 = vadd.f32 %v1014_v13, %v1013_v38  ;;  %v1775_v28 = vsel %vm1333_vm4, %v3212_v17, %v1774_v9 }
 0x10f   : > { %v1033_v39 = vrot.slane %v1032_v7, 2  ;;  %v1767_v23 = vsel %vm1331_vm3, %v994_v40, %v987_v11  ;;  %v1149_v44 = vsel %vm568_vm2, %v3228_v61, 0.0  ;;  %v1776_v43 = vsel %vm1335_vm5, %v3214_v63, %v1775_v28 }
 0x110   : > { %v1019_v6 = vrot.slane %v1018_v36, 2  ;;  %v1028_v4 = vrot.slane %v1027_v16, 1  ;;  %v1768_v45 = vsel %vm1333_vm4, %v1001_v48, %v1767_v23  ;;  %v1163_v52 = vsel %vm568_vm2, %v3235_v10, 0.0 }
 0x111   : > { %v1034_v5 = vadd.f32 %v1033_v39, %v1032_v7  ;;  %v1769_v25 = vsel %vm1335_vm5, %v1008_v24, %v1768_v45  ;;  %v1777_v30 = vsel %vm1337_vm6, %v3216_v31, %v1776_v43  ;;  %v1157_v17 = vrot.slane %v3267_v0, 4 }
 0x112   : > { %v1020_v12 = vadd.f32 %v1019_v6, %v1018_v36  ;;  %v1029_v37 = vadd.f32 %v1028_v4, %v1027_v16  ;;  %v1170_v61 = vsel %vm568_vm2, %v3239_v62, 0.0  ;;  %v1770_v60 = vsel %vm1337_vm6, %v1015_v26, %v1769_v25 }
 0x113   : > { %v1035_v47 = vrot.slane %v1034_v5, 1  ;;  %v1778_v57 = vsel %vm1339_vm7, %v3218_v1, %v1777_v30  ;;  %v1177_v63 = vsel %vm568_vm2, %v3243_v29, 0.0  ;;  %v1164_v31 = vrot.slane %v1163_v52, 4 }
 0x114   : > { %v1021_v59 = vrot.slane %v1020_v12, 1  ;;  %v1779_v18 = vsel %vm1341_vm8, %v3221_v42, %v1778_v57  ;;  %v1184_v36 = vsel %vm568_vm2, %v3248_v55, 0.0  ;;  %v1150_v1 = vrot.slane %v1149_v44, 4 }
 0x115   : > { %v1036_v10 = vadd.f32 %v1035_v47, %v1034_v5  ;;  %v3316_v22 = vsel %vm1343_vm9, %v3223_v19, %v1779_v18  ;;  %v1171_v33 = vrot.slane %v1170_v61, 4  ;;  %v1191_v29 = vsel %vm568_vm2, %v3257_v14, 0.0 }
 0x116   : > { %v1022_v2 = vadd.f32 %v1021_v59, %v1020_v12  ;;  %v1178_v49 = vrot.slane %v1177_v63, 4  ;;  %v1198_v42 = vsel %vm568_vm2, %v3261_v21, 0.0  ;;  %v1158_v50 = vadd.f32 %v1157_v17, %v3267_v0 }
 0x117   : > { %v1185_v51 = vrot.slane %v1184_v36, 4  ;;  %v1165_v19 = vadd.f32 %v1164_v31, %v1163_v52  ;;  %v1192_v56 = vrot.slane %v1191_v29, 4  ;;  %v1151_v6 = vadd.f32 %v1150_v1, %v1149_v44  ;;  %v2424_v1 = vld [vmem:[%s2629_s18 + $0x44] sm:$0xf] }
 0x118   : > { %v1771_v15 = vsel %vm1339_vm7, %v1022_v2, %v1770_v60  ;;  %v1172_v3 = vadd.f32 %v1171_v33, %v1170_v61  ;;  %v1199_v46 = vrot.slane %v1198_v42, 4  ;;  %v1179_v8 = vadd.f32 %v1178_v49, %v1177_v63 }
 0x119   : > { %v1772_v62 = vsel %vm1341_vm8, %v1029_v37, %v1771_v15  ;;  %v1159_v14 = vrot.slane %v1158_v50, 2  ;;  %v1186_v38 = vadd.f32 %v1185_v51, %v1184_v36  ;;  %v1166_v54 = vrot.slane %v1165_v19, 2  ;;  %v2423_v36 = vld [vmem:[%s2629_s18 + $0x40] sm:$0xf]  ;;  %v2426_v51 = vld [vmem:[%s2629_s18 + $0x4c] sm:$0xf] }
 0x11a   : > { %v3321_v35 = vsel %vm1343_vm9, %v1036_v10, %v1772_v62  ;;  %v1193_v34 = vadd.f32 %v1192_v56, %v1191_v29  ;;  %v1152_v32 = vrot.slane %v1151_v6, 2  ;;  %v1173_v12 = vrot.slane %v1172_v3, 2  ;;  %v2425_v29 = vld [vmem:[%s2629_s18 + $0x48] sm:$0xf] }
 0x11b   : > { %v2362_v55 = vpack.c.bf16 %v3316_v22, %v3321_v35  ;;  %v1200_v7 = vadd.f32 %v1199_v46, %v1198_v42  ;;  %v1180_v21 = vrot.slane %v1179_v8, 2  ;;  %v1160_v11 = vadd.f32 %v1159_v14, %v1158_v50  ;;  %v2427_v46 = vld [vmem:[%s2629_s18 + $0x50] sm:$0xf] }
 0x11c   : > { %v1187_v20 = vrot.slane %v1186_v38, 2  ;;  %v1167_v13 = vadd.f32 %v1166_v54, %v1165_v19  ;;  %v1194_v16 = vrot.slane %v1193_v34, 2  ;;  %v1153_v0 = vadd.f32 %v1152_v32, %v1151_v6  ;;  %v2428_v32 = vld [vmem:[%s2629_s18 + $0x54] sm:$0xf] }
 0x11d   : > { %v1174_v40 = vadd.f32 %v1173_v12, %v1172_v3  ;;  %v1201_v48 = vrot.slane %v1200_v7, 2  ;;  %v1181_v59 = vadd.f32 %v1180_v21, %v1179_v8  ;;  %v1161_v39 = vrot.slane %v1160_v11, 1 }
 0x11e   : > { %v1188_v24 = vadd.f32 %v1187_v20, %v1186_v38  ;;  %v1168_v26 = vrot.slane %v1167_v13, 1  ;;  %v1195_v4 = vadd.f32 %v1194_v16, %v1193_v34  ;;  %v1154_v9 = vrot.slane %v1153_v0, 1  ;;  %v2429_v20 = vld [vmem:[%s2629_s18 + $0x58] sm:$0xf] }
 0x11f   : > { %v1175_v2 = vrot.slane %v1174_v40, 1  ;;  %v1202_v5 = vadd.f32 %v1201_v48, %v1200_v7  ;;  %v1182_v23 = vrot.slane %v1181_v59, 1  ;;  %v1162_v28 = vadd.f32 %v1161_v39, %v1160_v11 }
 0x120   : > { %v1189_v44 = vrot.slane %v1188_v24, 1  ;;  %v1169_v37 = vadd.f32 %v1168_v26, %v1167_v13  ;;  %v1196_v45 = vrot.slane %v1195_v4, 1  ;;  %v1155_v47 = vadd.f32 %v1154_v9, %v1153_v0  ;;  %v3358_v13 = vld [vmem:[%s3482_s3] sm:$0xf] }
 0x121   : > { %v1176_v43 = vadd.f32 %v1175_v2, %v1174_v40  ;;  %v1203_v52 = vrot.slane %v1202_v5, 1  ;;  %v1183_v25 = vadd.f32 %v1182_v23, %v1181_v59  ;;  %v709_v62 = vmul.f32 %v2423_v36, %v2985_v58 }
 0x122   : > { %v1190_v30 = vadd.f32 %v1189_v44, %v1188_v24  ;;  %v1990_v17 = vsel %vm1331_vm3, %v1162_v28, %v1155_v47  ;;  %v1197_v61 = vadd.f32 %v1196_v45, %v1195_v4  ;;  %v710_v33 = vmul.f32 %v2424_v1, %v2985_v58  ;;  %v2431_v24 = vld [vmem:[%s2629_s18 + $0x5c] sm:$0xf] }
 0x123   : > { %v1991_v60 = vsel %vm1333_vm4, %v1169_v37, %v1990_v17  ;;  %v1204_v57 = vadd.f32 %v1203_v52, %v1202_v5  ;;  %v711_v49 = vmul.f32 %v2425_v29, %v2985_v58  ;;  %v869_v42 = vsel %vm568_vm2, %v709_v62, 0.0 }
 0x124   : > { %v1992_v63 = vsel %vm1335_vm5, %v1176_v43, %v1991_v60  ;;  %v876_v50 = vsel %vm568_vm2, %v710_v33, 0.0  ;;  %v712_v19 = vmul.f32 %v2426_v51, %v2985_v58  ;;  %v870_v56 = vrot.slane %v869_v42, 4 }
 0x125   : > { %v1993_v10 = vsel %vm1337_vm6, %v1183_v25, %v1992_v63  ;;  %v877_v6 = vrot.slane %v876_v50, 4  ;;  %v883_v3 = vsel %vm568_vm2, %v711_v49, 0.0  ;;  %v713_v8 = vmul.f32 %v2427_v46, %v2985_v58 }
 0x126   : > { %v1994_v15 = vsel %vm1339_vm7, %v1190_v30, %v1993_v10  ;;  %v884_v14 = vrot.slane %v883_v3, 4  ;;  %v890_v38 = vsel %vm568_vm2, %v712_v19, 0.0  ;;  %v871_v54 = vadd.f32 %v870_v56, %v869_v42 }
 0x127   : > { %v1995_v18 = vsel %vm1341_vm8, %v1197_v61, %v1994_v15  ;;  %v878_v34 = vadd.f32 %v877_v6, %v876_v50  ;;  %v714_v12 = vmul.f32 %v2428_v32, %v2985_v58  ;;  %v891_v7 = vrot.slane %v890_v38, 4 }
 0x128   : > { %v3335_v31 = vsel %vm1343_vm9, %v1204_v57, %v1995_v18  ;;  %v897_v21 = vsel %vm568_vm2, %v713_v8, 0.0  ;;  %v885_v11 = vadd.f32 %v884_v14, %v883_v3  ;;  %v715_v16 = vmul.f32 %v3358_v13, %v2429_v20  ;;  %v2433_v20 = vld [vmem:[%s2629_s18 + $0xc4] sm:$0xf] }
 0x129   : > { %v872_v0 = vrot.slane %v871_v54, 2  ;;  %v879_v40 = vrot.slane %v878_v34, 2  ;;  %v898_v48 = vrot.slane %v897_v21, 4  ;;  %v904_v59 = vsel %vm568_vm2, %v714_v12, 0.0 }
 0x12a   : > { %v892_v39 = vadd.f32 %v891_v7, %v890_v38  ;;  %v716_v58 = vmul.f32 %v2431_v24, %v3358_v13  ;;  %v886_v26 = vrot.slane %v885_v11, 2  ;;  %v905_v2 = vrot.slane %v904_v59, 4 }
 0x12b   : > { %v873_v4 = vadd.f32 %v872_v0, %v871_v54  ;;  %v880_v9 = vadd.f32 %v879_v40, %v878_v34  ;;  %v911_v5 = vsel %vm568_vm2, %v715_v16, 0.0  ;;  %v899_v23 = vadd.f32 %v898_v48, %v897_v21  ;;  %v2432_v21 = vld [vmem:[%s2629_s18 + $0xc0] sm:$0xf]  ;;  %v2434_v40 = vld [vmem:[%s2629_s18 + $0xc8] sm:$0xf] }
 0x12c   : > { %v893_v28 = vrot.slane %v892_v39, 2  ;;  %v887_v44 = vadd.f32 %v886_v26, %v885_v11  ;;  %v912_v37 = vrot.slane %v911_v5, 4  ;;  %v918_v45 = vsel %vm568_vm2, %v716_v58, 0.0  ;;  %v2435_v26 = vld [vmem:[%s2629_s18 + $0xcc] sm:$0xf] }
 0x12d   : > { %v874_v43 = vrot.slane %v873_v4, 1  ;;  %v881_v52 = vrot.slane %v880_v9, 1  ;;  %v906_v47 = vadd.f32 %v905_v2, %v904_v59  ;;  %v900_v25 = vrot.slane %v899_v23, 2 }
 0x12e   : > { %v894_v30 = vadd.f32 %v893_v28, %v892_v39  ;;  %v919_v17 = vrot.slane %v918_v45, 4  ;;  %v888_v61 = vrot.slane %v887_v44, 1  ;;  %v913_v60 = vadd.f32 %v912_v37, %v911_v5 }
 0x12f   : > { %v875_v57 = vadd.f32 %v874_v43, %v873_v4  ;;  %v882_v63 = vadd.f32 %v881_v52, %v880_v9  ;;  %v907_v10 = vrot.slane %v906_v47, 2  ;;  %v901_v15 = vadd.f32 %v900_v25, %v899_v23  ;;  %v2437_v52 = vld [vmem:[%s2629_s18 + $0xd4] sm:$0xf] }
 0x130   : > { %v895_v18 = vrot.slane %v894_v30, 1  ;;  %v920_v36 = vadd.f32 %v919_v17, %v918_v45  ;;  %v889_v62 = vadd.f32 %v888_v61, %v887_v44  ;;  %v914_v1 = vrot.slane %v913_v60, 2  ;;  %v2438_v61 = vld [vmem:[%s2629_s18 + $0xd8] sm:$0xf] }
 0x131   : > { %v908_v33 = vadd.f32 %v907_v10, %v906_v47  ;;  %v1551_v29 = vsel %vm1331_vm3, %v882_v63, %v875_v57  ;;  %v902_v49 = vrot.slane %v901_v15, 1  ;;  %v741_v11 = vmul.f32 %v2432_v21, %v3358_v13 }
 0x132   : > { %v896_v42 = vadd.f32 %v895_v18, %v894_v30  ;;  %v921_v50 = vrot.slane %v920_v36, 2  ;;  %v915_v51 = vadd.f32 %v914_v1, %v913_v60  ;;  %v1552_v19 = vsel %vm1333_vm4, %v889_v62, %v1551_v29 }
 0x133   : > { %v909_v56 = vrot.slane %v908_v33, 1  ;;  %v903_v6 = vadd.f32 %v902_v49, %v901_v15  ;;  %v742_v16 = vmul.f32 %v2433_v20, %v3358_v13  ;;  %v743_v48 = vmul.f32 %v2434_v40, %v3358_v13 }
 0x134   : > { %v922_v3 = vadd.f32 %v921_v50, %v920_v36  ;;  %v1553_v46 = vsel %vm1335_vm5, %v896_v42, %v1552_v19  ;;  %v916_v8 = vrot.slane %v915_v51, 1  ;;  %v1093_v39 = vsel %vm568_vm2, %v741_v11, 0.0  ;;  %v2439_v36 = vld [vmem:[%s2629_s18 + $0xdc] sm:$0xf] }
 0x135   : > { %v910_v14 = vadd.f32 %v909_v56, %v908_v33  ;;  %v1554_v38 = vsel %vm1337_vm6, %v903_v6, %v1553_v46  ;;  %v1100_v24 = vsel %vm568_vm2, %v742_v16, 0.0  ;;  %v744_v4 = vmul.f32 %v2435_v26, %v3358_v13 }
 0x136   : > { %v923_v54 = vrot.slane %v922_v3, 1  ;;  %v917_v34 = vadd.f32 %v916_v8, %v915_v51  ;;  %v1094_v2 = vrot.slane %v1093_v39, 4  ;;  %v1101_v5 = vrot.slane %v1100_v24, 4 }
 0x137   : > { %v1555_v32 = vsel %vm1339_vm7, %v910_v14, %v1554_v38  ;;  %v1107_v23 = vsel %vm568_vm2, %v743_v48, 0.0  ;;  %v1114_v37 = vsel %vm568_vm2, %v744_v4, 0.0  ;;  %v746_v47 = vmul.f32 %v2437_v52, %v3358_v13 }
 0x138   : > { %v924_v12 = vadd.f32 %v923_v54, %v922_v3  ;;  %v1556_v7 = vsel %vm1341_vm8, %v917_v34, %v1555_v32  ;;  %v1108_v44 = vrot.slane %v1107_v23, 4  ;;  %v1095_v45 = vadd.f32 %v1094_v2, %v1093_v39 }
 0x139   : > { %v1102_v43 = vadd.f32 %v1101_v5, %v1100_v24  ;;  %v1115_v25 = vrot.slane %v1114_v37, 4  ;;  %v747_v60 = vmul.f32 %v2438_v61, %v3358_v13  ;;  %v1128_v15 = vsel %vm568_vm2, %v746_v47, 0.0  ;;  %v323_v61 = vld [vmem:[%s3483_s4] sm:$0xff] }
 0x13a   : > { %v1557_v0 = vsel %vm1343_vm9, %v924_v12, %v1556_v7  ;;  %v1109_v17 = vadd.f32 %v1108_v44, %v1107_v23  ;;  %v1096_v57 = vrot.slane %v1095_v45, 2  ;;  %v748_v62 = vmul.f32 %v2439_v36, %v3358_v13 }
 0x13b   : > { %v2359_v59 = vpack.c.bf16 %v3270_v53, %v1557_v0  ;;  %v2436_v53 = vld [vmem:[%s2629_s18 + $0xd0] sm:$0xf]  ;;  %v1103_v63 = vrot.slane %v1102_v43, 2  ;;  %v1116_v18 = vadd.f32 %v1115_v25, %v1114_v37  ;;  %v1129_v49 = vrot.slane %v1128_v15, 4  ;;  %s2257_s18 = sshll.u32 %s245_s17, 3 }
 0x13c   : > { %v745_v28 = vmul.f32 %v2436_v53, %v3358_v13  ;;  %v1110_v1 = vrot.slane %v1109_v17, 2  ;;  %v1097_v33 = vadd.f32 %v1096_v57, %v1095_v45  ;;  %v1135_v42 = vsel %vm568_vm2, %v747_v60, 0.0  ;;  %s247_s20 = scalar_lea.vmem [#allocation3], %s2257_s18 }
 0x13d   : > { %v1104_v29 = vadd.f32 %v1103_v63, %v1102_v43  ;;  %v1117_v51 = vrot.slane %v1116_v18, 2  ;;  %v1136_v56 = vrot.slane %v1135_v42, 4  ;;  %v1142_v6 = vsel %vm568_vm2, %v748_v62, 0.0  ;;  %s2194_s26 = sshll.u32 %s247_s20, 4  ;;  %s3438_s26 = int_to_ptr.vmem [resolvable:$true] %s2194_s26 }
 0x13e   : > { %v1121_v30 = vsel %vm568_vm2, %v745_v28, 0.0  ;;  %v1111_v19 = vadd.f32 %v1110_v1, %v1109_v17  ;;  %v1098_v3 = vrot.slane %v1097_v33, 1  ;;  %v1130_v8 = vadd.f32 %v1129_v49, %v1128_v15  ;;  %s2440_s11 = scalar_lea.vmem %s3438_s26, 128 }
 0x13f   : > { %v1122_v10 = vrot.slane %v1121_v30, 4  ;;  %v1105_v46 = vrot.slane %v1104_v29, 1  ;;  %v1118_v38 = vadd.f32 %v1117_v51, %v1116_v18  ;;  %v1143_v54 = vrot.slane %v1142_v6, 4  ;;  %p2441_p11 = scmp.ne.s32.totalorder %s3438_s26, %s2440_s11 }
 0x140   : > { %v1112_v34 = vrot.slane %v1111_v19, 1  ;;  %v1137_v13 = vadd.f32 %v1136_v56, %v1135_v42  ;;  %v1099_v12 = vadd.f32 %v1098_v3, %v1097_v33  ;;  %v1131_v21 = vrot.slane %v1130_v8, 2 }
 0x141   : > { %v1123_v50 = vadd.f32 %v1122_v10, %v1121_v30  ;;  %v1106_v7 = vadd.f32 %v1105_v46, %v1104_v29  ;;  %v1119_v16 = vrot.slane %v1118_v38, 1  ;;  %v1144_v0 = vadd.f32 %v1143_v54, %v1142_v6  ;;  %v2085_v6 = vld [vmem:[%s3484_s5] sm:$0xff]  ;;  %p2442_p12 = pnand %p2441_p11, %p2585_p5 }
 0x142   : > { %v1113_v40 = vadd.f32 %v1112_v34, %v1111_v19  ;;  %v1138_v48 = vrot.slane %v1137_v13, 2 }
 0x143   : > { %v1124_v14 = vrot.slane %v1123_v50, 2  ;;  %v1983_v39 = vsel %vm1331_vm3, %v1106_v7, %v1099_v12  ;;  %v1145_v26 = vrot.slane %v1144_v0, 2  ;;  %p2443_p13 = pneg %p2442_p12 }
 0x144   : > { %v1139_v4 = vadd.f32 %v1138_v48, %v1137_v13 }
 0x145   : > { %v1125_v20 = vadd.f32 %v1124_v14, %v1123_v50 }
 0x146   : > { %v1140_v5 = vrot.slane %v1139_v4, 1 }
 0x147   : > { %v1126_v24 = vrot.slane %v1125_v20, 1 }
 0x148   : > { %v1141_v28 = vadd.f32 %v1140_v5, %v1139_v4 }
 0x149   : > { %v1127_v35 = vadd.f32 %v1126_v24, %v1125_v20 }
 0x199   : > { %v1311_v58 = vpop.f32.mrb[0].mxu0 }
 0x19a   : > { %v2306_v9 = vpop.f32.mrb[1].mxu0  ;;  %2312 = vmatmul.mubr.msk.f32.vlgmr.msra.gmra.mrb[0].mxu1 %vm1354_vm11, %v1311_v58  ;;  %v1120_v58 = vadd.f32 %v1119_v16, %v1118_v38 }
 0x19b   : > { %2360 = vmatpush3.bf16.msra.mxu1 %v2359_v59  ;;  %2323 = vmatprep.mubr.msk.f32.mxu1 %vm2506_vm1, %v3523_v27  ;;  %v1132_v59 = vadd.f32 %v1131_v21, %v1130_v8  ;;  %v1984_v9 = vsel %vm1333_vm4, %v1113_v40, %v1983_v39 }
 0x19c   : > { %2361 = vmatprep.subr.bf16.mxu1 %v3522_v41  ;;  %v1985_v2 = vsel %vm1335_vm5, %v1120_v58, %v1984_v9 }
 0x19d   : > { %v1133_v22 = vrot.slane %v1132_v59, 1 }
 0x19f   : > { %v1134_v23 = vadd.f32 %v1133_v22, %v1132_v59 }
 0x1a7   : > { %v1531_v32 = vpop.f32.mrb[2].mxu0 }
 0x1a8   : > { %v2318_v11 = vpop.f32.mrb[3].mxu0  ;;  %2324 = vmatmul.mubr.msk.f32.vlgmr.msra.gmra.mrb[2].mxu1 %vm1354_vm11, %v1531_v32 }
 0x1a9   : > { %2363 = vmatpush3.bf16.msra.mxu1 %v2362_v55  ;;  %2335 = vmatprep.mubr.msk.f32.mxu1 %vm2506_vm1, %v3523_v27  ;;  %v1146_v55 = vadd.f32 %v1145_v26, %v1144_v0 }
 0x1aa   : > { %2364 = vmatprep.subr.bf16.mxu1 %v3522_v41  ;;  %v1986_v41 = vsel %vm1337_vm6, %v1127_v35, %v1985_v2 }
 0x1ab   : > { %v1147_v53 = vrot.slane %v1146_v55, 1  ;;  %v1987_v44 = vsel %vm1339_vm7, %v1134_v23, %v1986_v41 }
 0x1ac   : > { %v1988_v45 = vsel %vm1341_vm8, %v1141_v28, %v1987_v44 }
 0x1ad   : > { %v1148_v37 = vadd.f32 %v1147_v53, %v1146_v55 }
 0x1af   : > { %v1989_v43 = vsel %vm1343_vm9, %v1148_v37, %v1988_v45 }
 0x1b0   : > { %v2365_v52 = vpack.c.bf16 %v3335_v31, %v1989_v43 }
 0x1be   : > { %v1747_v47 = vpop.f32.mrb[4].mxu0 }
 0x1bf   : > { %v2330_v25 = vpop.f32.mrb[5].mxu0  ;;  %2336 = vmatmul.mubr.msk.f32.vlgmr.msra.gmra.mrb[4].mxu1 %vm1354_vm11, %v1747_v47 }
 0x1c0   : > { %2366 = vmatpush3.bf16.msra.mxu1 %v2365_v52  ;;  %2347 = vmatprep.mubr.msk.f32.mxu1 %vm2506_vm1, %v3523_v27 }
 0x1d6   : > { %v1963_v30 = vpop.f32.mrb[6].mxu0 }
 0x1d7   : > { %v2342_v17 = vpop.f32.mrb[7].mxu0  ;;  %2348 = vmatmul.mubr.msk.f32.vlgmr.msra.gmra.mrb[6].mxu1 %vm1354_vm11, %v1963_v30 }
 0x26d   : > { %v1424_v60 = vpop.f32.mrb[0].mxu1 }
 0x26e   : > { %v1425_v57 = vadd.f32 %v1424_v60, %v323_v61  ;;  %v2313_v31 = vpop.f32.mrb[1].mxu1 }
 0x270   : > { %1429 = vst.msk [vmem:[#allocation2] sm:$0xff] %vm1428_vm12, %v1425_v57 }
 0x27b   : > { %v1636_v63 = vpop.f32.mrb[2].mxu1 }
 0x27c   : > { %v1637_v10 = vadd.f32 %v1636_v63, %v323_v61  ;;  %v2325_v15 = vpop.f32.mrb[3].mxu1 }
 0x27e   : > { %1641 = vrot.lane.b32.xlu0 %v1637_v10, %s2508_s12  ;;  %s2444_s12 = sshll.u32 %s2511_s25, 4  ;;  %s2445_s12 = int_to_ptr.vmem [resolvable:$false] %s2444_s12 }
 0x27f   : > { %p2447_p0 = scmp.lt.s32.totalorder %s3438_s26, %s2445_s12 }
 0x292   : > { %v1852_v27 = vpop.f32.mrb[4].mxu1 }
 0x293   : > { %v1853_v18 = vadd.f32 %v1852_v27, %v323_v61  ;;  %v2337_v36 = vpop.f32.mrb[5].mxu1 }
 0x295   : > { %1857 = vrot.lane.b32.xlu1 %v1853_v18, %s2509_s13  ;;  %s2446_s13 = scalar_lea.vmem %s2445_s12, 256 }
 0x296   : > { %p2448_p1 = scmp.lt.s32.totalorder %s2446_s13, %s2440_s11 }
 0x298   : > { %p2449_p2 = por %p2448_p1, %p2447_p0 }
 0x29a   : > { %p2450_p3 = pnand %p2449_p2, %p2443_p13 }
 0x2aa   : > { %v2068_v62 = vpop.f32.mrb[6].mxu1 }
 0x2ab   : > { %v2069_v1 = vadd.f32 %v2068_v62, %v323_v61  ;;  %v2349_v33 = vpop.f32.mrb[7].mxu1 }
 0x2ad   : > { %2073 = vrot.lane.b32.xlu1 %v2069_v1, %s2510_s14 }
 0x2f0   : > { %v1642_v29 = vpop.permute.xlu0 %1641 }
 0x2f1   : > { %1645 = vst.msk [vmem:[#allocation2] sm:$0xff] %vm1644_vm13, %v1642_v29 }
 0x307   : > { %v1858_v49 = vpop.permute.xlu1 %1857 }
 0x308   : > { %1861 = vst.msk [vmem:[#allocation2] sm:$0xff] %vm1860_vm14, %v1858_v49 }
 0x31f   : > { %v2074_v42 = vpop.permute.xlu1 %2073 }
 0x320   : > { %2077 = vst.msk [vmem:[#allocation2] sm:$0xff] %vm2076_vm15, %v2074_v42 }
 0x327   : > { %v2078_v50 = vld [vmem:[#allocation2] sm:$0xff] }
 0x328   : > { %v2273_v51 = vmul.f32 -1.442695, %v2078_v50 }
 0x32a   : > { %2415 = vpow2.f32 %v2273_v51 }
 0x334   : > { %v2416_v19 = vpop.eup %2415 }
 0x335   : > { %v2082_v56 = vadd.f32 1.0, %v2416_v19 }
 0x337   : > { %2417 = vrcp.f32 %v2082_v56 }
 0x341   : > { %v2418_v3 = vpop.eup %2417 }
 0x342   : > { %2351 = vmatpush3.msra.mxu0 %v2418_v3 }
 0x343   : > { %2353 = vmatmul.mubr.msk.f32.vlgmr.msra.gmra.mrb[8].mxu0 %vm1428_vm12, %v2085_v6 }
 0x416   : > { %v2155_v46 = vpop.f32.mrb[8].mxu0 }
 0x417   : > { %v2160_v8 = vsel %vm2159_vm0, %v2155_v46, -inf  ;;  %v2354_v14 = vpop.f32.mrb[9].mxu0 }
 0x418   : > { %v2161_v38 = vrot.slane %v2160_v8, 4 }
 0x41a   : > { %v2162_v54 = vmax.f32 %v2160_v8, %v2161_v38 }
 0x41c   : > { %v2163_v34 = vrot.slane %v2162_v54, 2 }
 0x41e   : > { %v2164_v13 = vmax.f32 %v2162_v54, %v2163_v34 }
 0x420   : > { %v2165_v32 = vrot.slane %v2164_v13, 1 }
 0x422   : > { %v2166_v12 = vmax.f32 %v2164_v13, %v2165_v32 }
 0x424   : > { %v2167_v7 = vsub.f32 %v2155_v46, %v2166_v12 }
 0x426   : > { %v2168_v21 = vmul.f32 1.442695, %v2167_v7 }
 0x428   : > { %2419 = vpow2.f32 %v2168_v21 }
 0x432   : > { %v2420_v11 = vpop.eup %2419 }
 0x433   : > { %v2170_v20 = vsel %vm2159_vm0, %v2420_v11, 0.0 }
 0x434   : > { %v2171_v16 = vrot.slane %v2170_v20, 4 }
 0x436   : > { %v2172_v0 = vadd.f32 %v2171_v16, %v2170_v20 }
 0x438   : > { %v2173_v40 = vrot.slane %v2172_v0, 2 }
 0x43a   : > { %v2174_v48 = vadd.f32 %v2173_v40, %v2172_v0 }
 0x43c   : > { %v2175_v59 = vrot.slane %v2174_v48, 1 }
 0x43e   : > { %v2176_v39 = vadd.f32 %v2175_v59, %v2174_v48 }
 0x440   : > { %2421 = vrcp.f32 %v2176_v39 }
 0x44a   : > { %v2422_v24 = vpop.eup %2421 }
 0x44b   : > { %v2178_v58 = vmul.f32 %v2422_v24, %v2420_v11 }
 0x44d   : > { %2179 = vst.msk [vmem:[%s247_s20] sm:$0xff] %vm2159_vm0, %v2178_v58 }
 0x44e   : > { %2453 = shalt.err (!%p2450_p3)
}
 0x44f   : > { %s2454_s14 = scalar_lea.hbm %s3436_s9, 128  ;;  %s2458_s17 = scalar_lea.hbm %s3485_s6, 256 }
 0x450   : > { %p2455_p4 = scmp.ne.s32.totalorder %s3436_s9, %s2454_s14  ;;  %p2459_p9 = scmp.lt.u32.totalorder %s3436_s9, %s3485_s6 }
 0x451   : > { %p2460_p10 = scmp.lt.u32.totalorder %s2458_s17, %s2454_s14  ;;  %p2462_p12 = scmp.lt.u32.totalorder %s2454_s14, %s3436_s9 }
 0x452   : > { %p2456_p7 = pnand %p2455_p4, %p2585_p5 }
 0x453   : > { %p2461_p11 = por %p2460_p10, %p2459_p9 }
 0x454   : > { %p2457_p8 = pneg %p2456_p7 }
 0x455   : > { %p2463_p13 = por %p2462_p12, %p2461_p11 }
 0x457   : > { %p2464_p0 = pnand %p2463_p13, %p2457_p8 }
 0x459   : > { %2467 = shalt.err (!%p2464_p0)
}
 0x45a   : > { %2367 = dma.vmem_to_hbm [thread:$0]  (%p2585_p5), %s3438_s26, 128, %s3436_s9, %s2181_s10  }
 0x45b PF: > { %p2373_p1 = scmp.ge.s32.totalorder %s2502_s24, 2  ;;  %s2206_s20 = sand.u32 1, %s2490_s21  }
 0x45c   : > { %s2207_s28 = scalar_lea.sflag [#allocation4], %s2206_s20 }
 0x45d   : > { %p2370_p2 = pnand %p2373_p1, %p2589_p6 }
 0x45f   : > { %2485 = dma.done.wait (!%p2370_p2), %s2207_s28, 128  }
 0x460   : > { %2487 = vsyncadd (!%p2370_p2), %s2207_s28, 4294967168  ;;  %p16_p3 = scmp.ge.s32.totalorder %s2572_s27, 4   ;;  %s3537_s21 = smov %s2494_s22 }
 0x461   : > { %s3538_s22 = smov %s2498_s23  ;;  %s3539_s23 = smov %s2583_s30 }
 0x462   : > { %s3540_s24 = smov %s2572_s27  ;;  %18 = sbr.rel (!%p16_p3) target bundleno = 3 (0x3), region = 79 }
 0x469   :  { %2212 = vsyncpa [#allocation4], 1 }
 0x46a   :  { %2214 = vsyncpa [#allocation4 + $0x1], 1 }

</bundles_post_ra>
